<compile_context>
chip_gen: v6e
topology: v6e:2x2x1
jax: 0.10.0
libtpu: 0.0.40
codegen_flags: <defaults>
</compile_context>

<pallas_src>
import functools

import jax
import jax.numpy as jnp
from jax.experimental import pallas as pl
from jax.experimental.pallas import tpu as pltpu

METADATA_COLS = 3
TEMPERATURE = 1.0
LANE = 128


def _round_up(x, m):
    return ((x + m - 1) // m) * m


def _abmil_kernel(x_ref, bias_ref, w0_ref, wag_ref, rows_ref, wo_ref, bo_ref,
                  out_ref, *, bb, n_tiles, d_model):
    dm = d_model

    # ---- fused tile embedding for BB bags at once: (BB*N, Dt) @ (Dt, DM) ----
    x = x_ref[...].astype(jnp.bfloat16)                        # (BB, N, Dt)
    x2 = x.reshape(bb * n_tiles, x.shape[-1])                  # (BB*N, Dt)
    b0 = rows_ref[0:1, :]
    emb = jnp.dot(x2, w0_ref[...],
                  preferred_element_type=jnp.float32) + b0     # (BB*N, DM) f32
    emb_bf = emb.astype(jnp.bfloat16)                          # reused for gating + pooling
    # (f32 emb is dead from here on -> smaller live vreg footprint)

    # ---- gated attention: ONE fused (rows, DM) @ (DM, 2*DM) matmul ----
    pre = jnp.dot(emb_bf, wag_ref[...],
                  preferred_element_type=jnp.float32)          # (BB*N, 2*DM) f32
    ba = rows_ref[1:2, :]
    bg = rows_ref[2:3, :]
    h = jnp.tanh(pre[:, :dm] + ba)
    # one-EUP-op sigmoid: sigmoid(z) = 0.5 * (tanh(z/2) + 1)
    u = 0.5 * (jnp.tanh(0.5 * (pre[:, dm:] + bg)) + 1.0)
    gated = (h * u).reshape(bb, n_tiles, dm)                   # (BB, N, DM) f32

    # Attention logits: VPU multiply + lane reduce.  rows_ref[3] = ww/temperature;
    # bias_ref already carries bw/temperature and the -inf padding mask (additive).
    ww = rows_ref[3:4, :]                                      # (1, DM)
    att = jnp.sum(gated * ww, axis=-1) + bias_ref[...]         # (BB, N)

    # ---- lane-major softmax over the tiles axis ----
    m = jnp.max(att, axis=-1, keepdims=True)
    p = jnp.exp(att - m)
    inv_l = pl.reciprocal(jnp.sum(p, axis=-1, keepdims=True), approx=True)
    att_w = p * inv_l                                          # (BB, N)

    # ---- attention-weighted pooling over tiles (bf16 emb, f32 accumulate) ----
    emb3 = emb_bf.reshape(bb, n_tiles, dm)                     # (BB, N, DM) bf16
    scaled = jnp.sum(att_w[:, :, None] * emb3, axis=1)         # (BB, DM) f32

    # ---- final linear; output lanes padded to 128 for dense stores ----
    out_ref[...] = (jnp.dot(scaled, wo_ref[...],
                            preferred_element_type=jnp.float32) + bo_ref[...])


def abmil_forward(features, mask, params, *, temperature=TEMPERATURE,
                  metadata_cols=METADATA_COLS, block_bags=None, target_rows=512):
    """features: (B, N_TILES, METADATA_COLS + D), mask: (B, N_TILES, 1) bool."""
    B, N, Dt = features.shape
    DM = params["w0"].shape[1]
    OUT = params["wo"].shape[1]
    OUT_PAD = _round_up(max(OUT, LANE), LANE)
    assert temperature > 0.0
    inv_temp = 1.0 / float(temperature)

    # Fold the metadata-column drop into w0 (zero rows): raw features go straight
    # into the kernel, no HBM slice pass.  (Assumes metadata columns are finite.)
    w0_full = jnp.concatenate(
        [jnp.zeros((metadata_cols, DM), params["w0"].dtype), params["w0"]], axis=0)
    w0_bf = w0_full.astype(jnp.bfloat16)

    # Fuse the two gating projections into one 2*DM-wide bf16 weight (256-wide MXU).
    wag_bf = jnp.concatenate([params["wa"], params["wg"]], axis=1).astype(jnp.bfloat16)

    # Stack the small per-lane row vectors into one (4, DM) block:
    # [b0 ; ba ; bg ; ww / temperature].
    rows = jnp.concatenate(
        [params["b0"], params["ba"], params["bg"],
         params["ww"].reshape(1, DM) * inv_temp], axis=0).astype(jnp.float32)

    # Fold bw/temperature and the -inf padding mask into a single additive (B, N) bias.
    bw = params["bw"].reshape(())
    att_bias = jnp.where(mask[..., 0], -jnp.inf, bw * inv_temp).astype(jnp.float32)

    # Lane-pad the output projection for dense (BB, 128) stores.
    wo_pad = jnp.zeros((DM, OUT_PAD), jnp.float32).at[:, :OUT].set(params["wo"])
    bo_pad = jnp.zeros((1, OUT_PAD), jnp.float32).at[:, :OUT].set(params["bo"])

    # Bags per grid step: fill the MXU (>= target_rows rows) but bound the live
    # intermediate working set (~2 MiB: emb_bf + fused pre-activations + gated),
    # and keep >= 2 grid steps so v7x's two TensorCores both get work.
    if block_bags is None:
        bytes_per_row = DM * (2 + 8 + 4) + 2 * Dt
        rows_cap = max(N, (2 * 1024 * 1024) // bytes_per_row)
        want_rows = max(LANE, min(target_rows, rows_cap))
        bb = max(1, want_rows // N)
        if B >= 16:
            bb = min(bb, B // 2)
        if bb >= B:
            block_bags = B
        else:
            block_bags = min(max(8, (bb // 8) * 8), B)
    BB = block_bags
    Bp = _round_up(B, BB)
    assert BB == Bp or BB % 8 == 0, "block_bags must be a multiple of 8 or cover B"
    if Bp != B:
        pad = Bp - B
        features = jnp.concatenate(
            [features, jnp.zeros((pad, N, Dt), features.dtype)], axis=0)
        att_bias = jnp.concatenate(
            [att_bias, jnp.zeros((pad, N), jnp.float32)], axis=0)
    num_blocks = Bp // BB

    # VMEM budget from the actual working set (double-buffered blocks + weights
    # + live intermediates), with headroom; never request v7x's whole 64 MiB.
    itemsize = jnp.dtype(features.dtype).itemsize
    feat_block = BB * N * Dt * itemsize
    bias_block = BB * N * 4
    out_block = BB * OUT_PAD * 4
    weight_bytes = (w0_bf.size * 2 + wag_bf.size * 2 + rows.size * 4 +
                    wo_pad.size * 4 + bo_pad.size * 4)
    live_interm = BB * N * DM * 14
    vmem_need = 2 * (feat_block + bias_block + out_block) + 2 * weight_bytes + live_interm
    vmem_limit = int(min(max(2 * vmem_need, 4 * 1024 * 1024), 32 * 1024 * 1024))

    # Advisory cost estimate so XLA schedules the custom call sensibly.
    flops = int(2 * Bp * N * DM * (Dt + 2 * DM + 1) + 2 * Bp * DM * OUT_PAD)
    transcendentals = int(2 * Bp * N * DM + Bp * N)
    bytes_accessed = int(Bp * N * Dt * itemsize + Bp * N * 4 + weight_bytes
                         + Bp * OUT_PAD * 4)

    kernel = functools.partial(_abmil_kernel, bb=BB, n_tiles=N, d_model=DM)

    def wmap(i):           # weights: same block every step -> stays resident in VMEM
        return (0, 0)

    out = pl.pallas_call(
        kernel,
        out_shape=jax.ShapeDtypeStruct((Bp, OUT_PAD), jnp.float32),
        grid=(num_blocks,),
        in_specs=[
            pl.BlockSpec((BB, N, Dt), lambda i: (i, 0, 0)),   # raw features (BB bags)
            pl.BlockSpec((BB, N), lambda i: (i, 0)),          # additive attention bias
            pl.BlockSpec((Dt, DM), wmap),                     # w0 (metadata rows = 0), bf16
            pl.BlockSpec((DM, 2 * DM), wmap),                 # wa|wg fused, bf16
            pl.BlockSpec((4, DM), wmap),                      # [b0; ba; bg; ww/temp]
            pl.BlockSpec((DM, OUT_PAD), wmap),                # wo (lane padded)
            pl.BlockSpec((1, OUT_PAD), wmap),                 # bo (lane padded)
        ],
        out_specs=pl.BlockSpec((BB, OUT_PAD), lambda i: (i, 0)),
        compiler_params=pltpu.CompilerParams(
            dimension_semantics=("parallel",),
            vmem_limit_bytes=vmem_limit),
        cost_estimate=pl.CostEstimate(
            flops=flops, transcendentals=transcendentals,
            bytes_accessed=bytes_accessed),
    )(features, att_bias, w0_bf, wag_bf, rows, wo_pad, bo_pad)

    return out[:B, :OUT]                                      # (B, OUT)


def abmil_reference(features, mask, params, temperature=TEMPERATURE):
    """Pure-JAX f32 reference mirroring the PyTorch forward."""
    x = features[..., METADATA_COLS:]
    emb = x @ params["w0"] + params["b0"]
    h = jnp.tanh(emb @ params["wa"] + params["ba"])
    u = jax.nn.sigmoid(emb @ params["wg"] + params["bg"])
    att = (h * u) @ params["ww"] + params["bw"]
    att = jnp.where(mask, -jnp.inf, att) / temperature
    w = jax.nn.softmax(att, axis=1)
    scaled = jnp.squeeze(jnp.swapaxes(w, 1, 2) @ emb, axis=1)
    return scaled @ params["wo"] + params["bo"]


def init_params(key, in_features, d_model, out_features):
    ks = jax.random.split(key, 10)

    def lin(kw, kb, fan_in, fan_out):
        lim = 1.0 / jnp.sqrt(fan_in)
        w = jax.random.uniform(kw, (fan_in, fan_out), jnp.float32, -lim, lim)
        b = jax.random.uniform(kb, (1, fan_out), jnp.float32, -lim, lim)
        return w, b

    w0, b0 = lin(ks[0], ks[1], in_features, d_model)   # TilesMLP final Linear
    wa, ba = lin(ks[2], ks[3], d_model, d_model)       # GatedAttention.att
    wg, bg = lin(ks[4], ks[5], d_model, d_model)       # GatedAttention.gate
    ww, bw = lin(ks[6], ks[7], d_model, 1)             # GatedAttention.w (MaskedLinear)
    wo, bo = lin(ks[8], ks[9], d_model, out_features)  # final MLP Linear
    return dict(w0=w0, b0=b0, wa=wa, ba=ba, wg=wg, bg=bg,
                ww=ww, bw=bw, wo=wo, bo=bo)


if __name__ == "__main__":
    B, N_TILES, IN_FEATURES, D_MODEL, OUT_FEATURES = 32, 16, 32, 128, 4

    key = jax.random.PRNGKey(0)
    k_feat, k_par = jax.random.split(key)

    # (B, N_TILES, METADATA_COLS + IN_FEATURES): first 3 columns are metadata.
    features = jax.random.normal(
        k_feat, (B, N_TILES, METADATA_COLS + IN_FEATURES), jnp.float32)

    # Padding mask: bag b has (b % 6) padded tail tiles (never fully padded).
    tile_idx = jnp.arange(N_TILES)[None, :]
    pad_counts = (jnp.arange(B) % 6)[:, None]
    mask = (tile_idx >= (N_TILES - pad_counts))[:, :, None]   # (B, N, 1) bool

    params = init_params(k_par, IN_FEATURES, D_MODEL, OUT_FEATURES)

    logits = jax.block_until_ready(abmil_forward(features, mask, params))
    ref = abmil_reference(features, mask, params)

    assert logits.shape == (B, OUT_FEATURES), logits.shape
    assert bool(jnp.all(jnp.isfinite(logits))), "non-finite logits"
    # bf16 MXU operands / bf16 pooling source (f32 accumulation) vs. pure-f32
    # reference -> loose tolerance.
    assert jnp.allclose(logits, ref, atol=2e-2, rtol=2e-2), (
        jnp.max(jnp.abs(logits - ref)))
    print("KERNEL_OK")
</pallas_src>

<mosaic_0001>
module attributes {stable_mosaic.version = 11 : i64} {
  func.func @_abmil_kernel(%arg0: i32, %arg1: memref<16x16x35xf32, #tpu.memory_space<vmem>>, %arg2: memref<16x16xf32, #tpu.memory_space<vmem>>, %arg3: memref<35x128xbf16, #tpu.memory_space<vmem>>, %arg4: memref<128x256xbf16, #tpu.memory_space<vmem>>, %arg5: memref<4x128xf32, #tpu.memory_space<vmem>>, %arg6: memref<128x128xf32, #tpu.memory_space<vmem>>, %arg7: memref<1x128xf32, #tpu.memory_space<vmem>>, %arg8: memref<16x128xf32, #tpu.memory_space<vmem>>) attributes {dimension_semantics = [#tpu.dimension_semantics<parallel>], iteration_bounds = array<i64: 2>, scalar_prefetch = 0 : i64, scratch_operands = 0 : i64, tpu.core_type = #tpu.core_type<tc>, window_params = [{transform_indices = @transform_0, window_bounds = array<i64: 16, 16, 35>}, {transform_indices = @transform_1, window_bounds = array<i64: 16, 16>}, {pipeline_mode = #tpu.pipeline_mode<synchronous>, transform_indices = @transform_2, window_bounds = array<i64: 35, 128>}, {pipeline_mode = #tpu.pipeline_mode<synchronous>, transform_indices = @transform_3, window_bounds = array<i64: 128, 256>}, {pipeline_mode = #tpu.pipeline_mode<synchronous>, transform_indices = @transform_4, window_bounds = array<i64: 4, 128>}, {pipeline_mode = #tpu.pipeline_mode<synchronous>, transform_indices = @transform_5, window_bounds = array<i64: 128, 128>}, {pipeline_mode = #tpu.pipeline_mode<synchronous>, transform_indices = @transform_6, window_bounds = array<i64: 1, 128>}, {transform_indices = @transform_7, window_bounds = array<i64: 16, 128>}]} {
    %c0 = arith.constant 0 : index
    %c0_0 = arith.constant 0 : index
    %c0_1 = arith.constant 0 : index
    %0 = vector.load %arg1[%c0, %c0_0, %c0_1] : memref<16x16x35xf32, #tpu.memory_space<vmem>>, vector<16x16x35xf32>
    %1 = arith.truncf %0 : vector<16x16x35xf32> to vector<16x16x35xbf16>
    %2 = vector.shape_cast %1 : vector<16x16x35xbf16> to vector<256x35xbf16>
    %c0_2 = arith.constant 0 : index
    %c0_3 = arith.constant 0 : index
    %3 = vector.load %arg5[%c0_2, %c0_3] : memref<4x128xf32, #tpu.memory_space<vmem>>, vector<1x128xf32>
    %c0_4 = arith.constant 0 : index
    %c0_5 = arith.constant 0 : index
    %4 = vector.load %arg3[%c0_4, %c0_5] : memref<35x128xbf16, #tpu.memory_space<vmem>>, vector<35x128xbf16>
    %cst = arith.constant dense<0.000000e+00> : vector<256x128xf32>
    %5 = tpu.matmul %2, %4, %cst {dimension_numbers = #tpu.dot_dimension_numbers<[1], [0], [0], [1], [0, 0, 1, 1], [], []>} : vector<256x35xbf16>, vector<35x128xbf16>, vector<256x128xf32> -> vector<256x128xf32>
    %6 = vector.broadcast %3 : vector<1x128xf32> to vector<256x128xf32>
    %7 = arith.addf %5, %6 : vector<256x128xf32>
    %8 = arith.truncf %7 : vector<256x128xf32> to vector<256x128xbf16>
    %c0_6 = arith.constant 0 : index
    %c0_7 = arith.constant 0 : index
    %9 = vector.load %arg4[%c0_6, %c0_7] : memref<128x256xbf16, #tpu.memory_space<vmem>>, vector<128x256xbf16>
    %cst_8 = arith.constant dense<0.000000e+00> : vector<256x256xf32>
    %10 = tpu.matmul %8, %9, %cst_8 {dimension_numbers = #tpu.dot_dimension_numbers<[1], [0], [0], [1], [0, 0, 1, 1], [], []>} : vector<256x128xbf16>, vector<128x256xbf16>, vector<256x256xf32> -> vector<256x256xf32>
    %c1 = arith.constant 1 : index
    %c0_9 = arith.constant 0 : index
    %11 = vector.load %arg5[%c1, %c0_9] : memref<4x128xf32, #tpu.memory_space<vmem>>, vector<1x128xf32>
    %c2 = arith.constant 2 : index
    %c0_10 = arith.constant 0 : index
    %12 = vector.load %arg5[%c2, %c0_10] : memref<4x128xf32, #tpu.memory_space<vmem>>, vector<1x128xf32>
    %13 = vector.extract_strided_slice %10 {offsets = [0, 0], sizes = [256, 128], strides = [1, 1]} : vector<256x256xf32> to vector<256x128xf32>
    %14 = vector.broadcast %11 : vector<1x128xf32> to vector<256x128xf32>
    %15 = arith.addf %13, %14 : vector<256x128xf32>
    %16 = math.tanh %15 : vector<256x128xf32>
    %17 = vector.extract_strided_slice %10 {offsets = [0, 128], sizes = [256, 128], strides = [1, 1]} : vector<256x256xf32> to vector<256x128xf32>
    %18 = vector.broadcast %12 : vector<1x128xf32> to vector<256x128xf32>
    %19 = arith.addf %17, %18 : vector<256x128xf32>
    %cst_11 = arith.constant 5.000000e-01 : f32
    %20 = vector.broadcast %cst_11 : f32 to vector<256x128xf32>
    %21 = arith.mulf %20, %19 : vector<256x128xf32>
    %22 = math.tanh %21 : vector<256x128xf32>
    %cst_12 = arith.constant 1.000000e+00 : f32
    %23 = vector.broadcast %cst_12 : f32 to vector<256x128xf32>
    %24 = arith.addf %22, %23 : vector<256x128xf32>
    %cst_13 = arith.constant 5.000000e-01 : f32
    %25 = vector.broadcast %cst_13 : f32 to vector<256x128xf32>
    %26 = arith.mulf %25, %24 : vector<256x128xf32>
    %27 = arith.mulf %16, %26 : vector<256x128xf32>
    %28 = vector.shape_cast %27 : vector<256x128xf32> to vector<16x16x128xf32>
    %c3 = arith.constant 3 : index
    %c0_14 = arith.constant 0 : index
    %29 = vector.load %arg5[%c3, %c0_14] : memref<4x128xf32, #tpu.memory_space<vmem>>, vector<1x128xf32>
    %30 = vector.shape_cast %29 : vector<1x128xf32> to vector<1x1x128xf32>
    %31 = vector.broadcast %30 : vector<1x1x128xf32> to vector<16x16x128xf32>
    %32 = arith.mulf %28, %31 : vector<16x16x128xf32>
    %cst_15 = arith.constant dense<0.000000e+00> : vector<16x16xf32>
    %33 = vector.multi_reduction <add>, %32, %cst_15 [2] : vector<16x16x128xf32> to vector<16x16xf32>
    %c0_16 = arith.constant 0 : index
    %c0_17 = arith.constant 0 : index
    %34 = vector.load %arg2[%c0_16, %c0_17] : memref<16x16xf32, #tpu.memory_space<vmem>>, vector<16x16xf32>
    %35 = arith.addf %33, %34 : vector<16x16xf32>
    %cst_18 = arith.constant dense<0xFF800000> : vector<16xf32>
    %36 = vector.multi_reduction <maximumf>, %35, %cst_18 [1] : vector<16x16xf32> to vector<16xf32>
    %37 = vector.shape_cast %36 : vector<16xf32> to vector<16x1xf32>
    %38 = vector.broadcast %37 : vector<16x1xf32> to vector<16x16xf32>
    %39 = arith.subf %35, %38 : vector<16x16xf32>
    %40 = math.exp %39 : vector<16x16xf32>
    %cst_19 = arith.constant dense<0.000000e+00> : vector<16xf32>
    %41 = vector.multi_reduction <add>, %40, %cst_19 [1] : vector<16x16xf32> to vector<16xf32>
    %42 = vector.shape_cast %41 : vector<16xf32> to vector<16x1xf32>
    %43 = tpu.reciprocal %42 {approx = true} : vector<16x1xf32> -> vector<16x1xf32>
    %44 = vector.broadcast %43 : vector<16x1xf32> to vector<16x16xf32>
    %45 = arith.mulf %40, %44 : vector<16x16xf32>
    %46 = vector.shape_cast %8 : vector<256x128xbf16> to vector<16x16x128xbf16>
    %47 = vector.shape_cast %45 : vector<16x16xf32> to vector<16x16x1xf32>
    %48 = arith.extf %46 : vector<16x16x128xbf16> to vector<16x16x128xf32>
    %49 = vector.broadcast %47 : vector<16x16x1xf32> to vector<16x16x128xf32>
    %50 = arith.mulf %49, %48 : vector<16x16x128xf32>
    %cst_20 = arith.constant dense<0.000000e+00> : vector<16x128xf32>
    %51 = vector.multi_reduction <add>, %50, %cst_20 [1] : vector<16x16x128xf32> to vector<16x128xf32>
    %c0_21 = arith.constant 0 : index
    %c0_22 = arith.constant 0 : index
    %52 = vector.load %arg6[%c0_21, %c0_22] : memref<128x128xf32, #tpu.memory_space<vmem>>, vector<128x128xf32>
    %cst_23 = arith.constant dense<0.000000e+00> : vector<16x128xf32>
    %53 = tpu.matmul %51, %52, %cst_23 {dimension_numbers = #tpu.dot_dimension_numbers<[1], [0], [0], [1], [0, 0, 1, 1], [], []>} : vector<16x128xf32>, vector<128x128xf32>, vector<16x128xf32> -> vector<16x128xf32>
    %c0_24 = arith.constant 0 : index
    %c0_25 = arith.constant 0 : index
    %54 = vector.load %arg7[%c0_24, %c0_25] : memref<1x128xf32, #tpu.memory_space<vmem>>, vector<1x128xf32>
    %55 = vector.broadcast %54 : vector<1x128xf32> to vector<16x128xf32>
    %56 = arith.addf %53, %55 : vector<16x128xf32>
    %c0_26 = arith.constant 0 : index
    %c0_27 = arith.constant 0 : index
    %57 = vector.load %arg8[%c0_26, %c0_27] : memref<16x128xf32, #tpu.memory_space<vmem>>, vector<16x128xf32>
    tpu.vector_store %arg8[%c0_26, %c0_27], %56 {strides = array<i32>} : memref<16x128xf32, #tpu.memory_space<vmem>>, vector<16x128xf32>,
    return
  }
  func.func @transform_0(%arg0: i32) -> (i32, i32, i32) {
    %c0_i32 = arith.constant 0 : i32
    %c0_i32_0 = arith.constant 0 : i32
    %c0_i32_1 = arith.constant 0 : i32
    return %arg0, %c0_i32, %c0_i32_0 : i32, i32, i32
  }
  func.func @transform_1(%arg0: i32) -> (i32, i32) {
    %c0_i32 = arith.constant 0 : i32
    %c0_i32_0 = arith.constant 0 : i32
    return %arg0, %c0_i32 : i32, i32
  }
  func.func @transform_2(%arg0: i32) -> (i32, i32) {
    %c0_i32 = arith.constant 0 : i32
    %c0_i32_0 = arith.constant 0 : i32
    %c0_i32_1 = arith.constant 0 : i32
    return %c0_i32, %c0_i32_0 : i32, i32
  }
  func.func @transform_3(%arg0: i32) -> (i32, i32) {
    %c0_i32 = arith.constant 0 : i32
    %c0_i32_0 = arith.constant 0 : i32
    %c0_i32_1 = arith.constant 0 : i32
    return %c0_i32, %c0_i32_0 : i32, i32
  }
  func.func @transform_4(%arg0: i32) -> (i32, i32) {
    %c0_i32 = arith.constant 0 : i32
    %c0_i32_0 = arith.constant 0 : i32
    %c0_i32_1 = arith.constant 0 : i32
    return %c0_i32, %c0_i32_0 : i32, i32
  }
  func.func @transform_5(%arg0: i32) -> (i32, i32) {
    %c0_i32 = arith.constant 0 : i32
    %c0_i32_0 = arith.constant 0 : i32
    %c0_i32_1 = arith.constant 0 : i32
    return %c0_i32, %c0_i32_0 : i32, i32
  }
  func.func @transform_6(%arg0: i32) -> (i32, i32) {
    %c0_i32 = arith.constant 0 : i32
    %c0_i32_0 = arith.constant 0 : i32
    %c0_i32_1 = arith.constant 0 : i32
    return %c0_i32, %c0_i32_0 : i32, i32
  }
  func.func @transform_7(%arg0: i32) -> (i32, i32) {
    %c0_i32 = arith.constant 0 : i32
    %c0_i32_0 = arith.constant 0 : i32
    return %arg0, %c0_i32 : i32, i32
  }
}

</mosaic_0001>

<bundles_post_ra>
// kernel: tpu_custom_call.1
= control target key start
LH: loop header
LB: loop body
LE: loop exit
PB: predicated region body
PF: predicated region fallthrough
CT: control target
= control target key end

     0   :  { %s4812_s0 = inlined_call_operand.hbm [shape: f32[32,16,35], index: 0, kind: input, shape index: {}]   ;;  %s4813_s1 = inlined_call_operand.vmem [shape: f32[32,16], index: 1, kind: input, shape index: {}]   ;;  %s4814_s2 = inlined_call_operand.vmem [shape: bf16[35,128], index: 2, kind: input, shape index: {}]   ;;  %s4815_s3 = inlined_call_operand.hbm [shape: bf16[128,256], index: 3, kind: input, shape index: {}]   ;;  %s4816_s4 = inlined_call_operand.vmem [shape: f32[4,128], index: 4, kind: input, shape index: {}]   ;;  %s4817_s5 = inlined_call_operand.hbm [shape: f32[128,128], index: 5, kind: input, shape index: {}]   ;;  %s4818_s6 = inlined_call_operand.vmem [shape: f32[1,128], index: 6, kind: input, shape index: {}]   ;;  %s4819_s7 = inlined_call_operand.hbm [shape: f32[32,128], index: 7, kind: output, shape index: {}]  }
   0x1   :  { %4861 = sst [smem:[#allocation30_spill]] %s4815_s3 }
   0x2   :  { %12 = vsyncpa [#allocation3], 0 }
   0x3   :  { %14 = vsyncpa [#allocation3 + $0x1], 0 }
   0x4   :  { %15 = vsyncpa [#allocation6], 0 }
   0x5   :  { %16 = vsyncpa [#allocation4], 0 }
   0x6   :  { %18 = vsyncpa [#allocation4 + $0x1], 0  ;;  %s3726_s24 = smov 0   ;;  %s3728_s25 = smov 0  }
   0x7   :  { %s3730_s26 = smov 0   ;;  %s3732_s27 = smov 0  }
   0x8 LB: > { %s3747_s28 = sadd.s32 4294967295, %s3674_s27   ;;  %s3038_s29 = sadd.s32 4294967294, %s3674_s27   ;;  %s3674_s27 = sphi %s3732_s27, %s4919_s27   ;;  %s3670_s26 = sphi %s3730_s26, %s4918_s26   ;;  %s3666_s25 = sphi %s3728_s25, %s4917_s25   ;;  %s3662_s24 = sphi %s3726_s24, %s4916_s24  }
   0x9   : > { %p44_p0 = scmp.ne.s32.totalorder %s3666_s25, %s3662_s24  ;;  %p4821_p1 = scmp.eq.s32.totalorder %s3747_s28, 0 }
   0xa   : > { %p199_p2 = scmp.eq.s32.totalorder %s3747_s28, 1  ;;  %p205_p3 = scmp.eq.s32.totalorder %s3038_s29, 1 }
   0xb   : > { %p3756_p4 = por %p4821_p1, %p44_p0  ;;  %p3039_p5 = scmp.ge.s32.totalorder %s3674_s27, 1 }
   0xc   : > { %p3761_p6 = por %p205_p3, %p44_p0  ;;  %p212_p7 = scmp.lt.s32.totalorder %s3674_s27, 3 }
   0xd   : > { %s4862_s30 = scalar_select %p3756_p4, 1, 0 }
   0xe   : > { %s4863_s8 = scalar_select %p3761_p6, 1, 0 }
   0xf   : > { %p3766_p8 = pnand %p3039_p5, %p212_p7  ;;  %s3676_s10 = smov [#allocation5]  }
  0x10   : > { %s227_s11 = sshll.u32 %s3676_s10, 4  ;;  %s3677_s13 = smov [#allocation7]   ;;  %s228_s11 = int_to_ptr.vmem [resolvable:$true] %s227_s11 }
  0x11   : > { %s4864_s9 = scalar_select %p3766_p8, 1, 0 }
  0x12   : > { %p3240_p9 = pneg %p3766_p8  ;;  %s243_s14 = sshll.u32 %s3677_s13, 4  ;;  %s244_s14 = int_to_ptr.vmem [resolvable:$true] %s243_s14 }
  0x13   : > { %s3537_s15 = scalar_lea.vmem %s228_s11, 2048  ;;  %p3545_p5 = scmp.lt.s32.totalorder %s228_s11, %s228_s11 }
  0x14   : > { %p3775_p11 = pnand %p3240_p9, %p4821_p1  ;;  %p3538_p13 = scmp.ne.s32.totalorder %s228_s11, %s3537_s15 }
  0x15   : > { %p3546_p7 = scmp.lt.s32.totalorder %s3537_s15, %s3537_s15 }
  0x16   : > { %p3528_p12 = pneg %p3775_p11 }
  0x17   : > { %p3547_p10 = por %p3546_p7, %p3545_p5 }
  0x18   : > { %p3540_p0 = pnand %p3538_p13, %p3528_p12 }
  0x1a   : > { %p3541_p3 = pneg %p3540_p0 }
  0x1c   : > { %p3548_p9 = pnand %p3547_p10, %p3541_p3 }
  0x1e   : > { %3551 = shalt.err (!%p3548_p9)
}
  0x1f   : > { %s4820_s16 = smov 128   ;;  %s4822_s17 = smov 8  }
  0x20   : > { %s4866_s3 = sld [smem:[#allocation30_spill]]  ;;  %s3563_s20 = scalar_lea.vmem %s244_s14, 2048 }
  0x21   : > { %p3564_p13 = scmp.ne.s32.totalorder %s244_s14, %s3563_s20  ;;  %p3571_p10 = scmp.lt.s32.totalorder %s244_s14, %s244_s14 }
  0x22   : > { %p3572_p3 = scmp.lt.s32.totalorder %s3563_s20, %s3563_s20 }
  0x23   : > { %p3566_p0 = pnand %p3564_p13, %p3528_p12 }
  0x24   : > { %p3573_p7 = por %p3572_p3, %p3571_p10 }
  0x25   : > { %p3567_p5 = pneg %p3566_p0 }
  0x26   : > { %3243 = dma.hbm_to_vmem [thread:$0]  (!%p3775_p11), %s4866_s3, 2048, %s228_s11, [#allocation6], %s4820_s16, %s4820_s16, %s4822_s17  }
  0x27   : > { %p3574_p9 = pnand %p3573_p7, %p3567_p5 }
  0x29   : > { %3577 = shalt.err (!%p3574_p9)
}
  0x2a   : > { %3246 = dma.hbm_to_vmem [thread:$0]  (!%p3775_p11), %s4817_s5, 2048, %s244_s14, [#allocation6], %s4820_s16, %s4820_s16, %s4822_s17  }
  0x2b   : > { %s3804_s23 = sadd.s32 1, %s3674_s27   ;;  %s31_s29 = sadd.s32 1, %s3670_s26 }
  0x2c   : > { %s28_s10 = ssub.s32 %s3674_s27, %s3804_s23  ;;  %p38_p12 = scmp.ne.s32.totalorder %s3670_s26, %s3666_s25 }
  0x2d   : > { %p29_p13 = scmp.eq.s32.totalorder %s28_s10, 0  ;;  %p39_p0 = scmp.eq.s32.totalorder %s3674_s27, 0 }
  0x2e   : > { %p3814_p5 = por %p199_p2, %p38_p12  ;;  %p3257_p10 = scmp.lt.s32.totalorder %s3674_s27, 2 }
  0x2f   : > { %s3820_s12 = scalar_select %p29_p13, %s3670_s26, %s31_s29  }
  0x30   : > { %s4867_s11 = scalar_select %p3814_p5, 1, 0 }
  0x31   : > { %p40_p3 = por %p39_p0, %p38_p12  ;;  %s260_s13 = sand.u32 1, %s3670_s26  }
  0x32   : > { %s3043_s15 = sshll.u32 %s260_s13, 8  ;;  %s3100_s14 = sshll.u32 %s3674_s27, 12 }
  0x33   : > { %s3827_s20 = scalar_lea.hbm %s4812_s0, %s3100_s14  ;;  %s264_s21 = scalar_lea.vmem [#allocation2], %s3043_s15 }
  0x34   : > { %s272_s22 = sshll.u32 %s264_s21, 4  ;;  %p3831_p2 = pnand %p3257_p10, %p40_p3  ;;  %s3829_s22 = int_to_ptr.vmem [resolvable:$true] %s272_s22 }
  0x35   : > { %s3835_s29 = scalar_lea.sflag [#allocation3], %s260_s13  ;;  %s3578_s16 = scalar_lea.hbm %s3827_s20, 4096 }
  0x36   : > { %p3579_p11 = scmp.ne.s32.totalorder %s3827_s20, %s3578_s16  ;;  %p3580_p7 = pneg %p3831_p2 }
  0x37   : > { %s3583_s15 = scalar_lea.hbm %s4812_s0, 8192  ;;  %p3584_p13 = scmp.lt.s32.totalorder %s3827_s20, %s4812_s0 }
  0x38   : > { %p3581_p9 = pnand %p3580_p7, %p3579_p11  ;;  %p3585_p0 = scmp.lt.s32.totalorder %s3583_s15, %s3578_s16 }
  0x3a   : > { %p3582_p12 = pneg %p3581_p9  ;;  %p3586_p10 = por %p3585_p0, %p3584_p13 }
  0x3c   : > { %p3587_p3 = pnand %p3586_p10, %p3582_p12 }
  0x3e   : > { %3590 = shalt.err (!%p3587_p3)
}
  0x3f   : > { %s3591_s13 = scalar_lea.vmem %s3829_s22, 4096  ;;  %s3680_s17 = smov [#allocation2]  }
  0x40   : > { %p3592_p1 = scmp.ne.s32.totalorder %s3829_s22, %s3591_s13  ;;  %s3596_s3 = sshll.u32 %s3680_s17, 4  ;;  %s3597_s3 = int_to_ptr.vmem [resolvable:$false] %s3596_s3 }
  0x41   : > { %s3598_s14 = scalar_lea.vmem %s3597_s3, 8192  ;;  %p3599_p9 = scmp.lt.s32.totalorder %s3829_s22, %s3597_s3 }
  0x42   : > { %p3594_p6 = pnand %p3592_p1, %p3580_p7  ;;  %p3600_p5 = scmp.lt.s32.totalorder %s3598_s14, %s3591_s13 }
  0x44   : > { %p3595_p11 = pneg %p3594_p6  ;;  %p3601_p4 = por %p3600_p5, %p3599_p9 }
  0x46   : > { %p3602_p8 = pnand %p3601_p4, %p3595_p11 }
  0x48   : > { %3605 = shalt.err (!%p3602_p8)
}
  0x49   : > { %s4869_s16 = smov 8   ;;  %s4870_s18 = smov 128  }
  0x4a   : > { %3250 = dma.hbm_to_vmem [thread:$0]  (!%p3831_p2), %s3827_s20, 4096, %s3829_s22, %s3835_s29, %s4870_s18, %s4870_s18, %s4869_s16  }
  0x4b   : > { %p4871_p1 = scmp.ne.s32.totalorder %s4864_s9, 0 }
  0x4d   : > { %293 = sbr.rel (%p4871_p1) target bundleno = 1752 (0x6d8), region = 48 }
  0x52   : > { %s3862_s17 = sand.u32 1, %s3666_s25   ;;  %p4872_p4 = scmp.ne.s32.totalorder %s4862_s30, 0 }
  0x53   : > { %s3048_s3 = sshll.u32 %s3862_s17, 8  ;;  %s296_s15 = scalar_lea.sflag [#allocation3], %s3862_s17 }
  0x54   : > { %s3866_s19 = scalar_lea.vmem [#allocation2], %s3048_s3 }
  0x55   : > { %3649 = dma.done.wait (%p4872_p4), %s296_s15, 4096  }
  0x56   : > { %3651 = vsyncadd (%p4872_p4), %s296_s15, 4294963200  ;;  %p4873_p6 = scmp.eq.s32.totalorder %s3747_s28, 0 }
  0x58   : > { %3653 = dma.done.wait (%p4873_p6), [#allocation6], 4096   ;;  %p4874_p8 = pmov %p4873_p6 }
  0x59   : > { %vm474_vm0 = vcmask 1040384   ;;  %vm475_vm1 = vcmask 1041408   ;;  %v3681_v0 = vmov 65535   ;;  %v3303_v3 = vld [vmem:[%s4814_s2 + $0x10] ss:$0 sps:$4 sm:$0x33]  }
  0x5a   : > { %3655 = vsyncadd (%p4874_p8), [#allocation6], 4294963200  ;;  %v476_v1 = vsel %vm474_vm0, 4294967295, %v3681_v0  ;;  %v3304_v5 = vld [vmem:[%s4814_s2 + $0x8] sm:$0xff]   ;;  %v352_v6 = vld [vmem:[%s3866_s19] sm:$0xff]  ;;  %vm425_vm2 = vcmask 285696  }
  0x5b   : > { %v477_v2 = vsel %vm475_vm1, %v476_v1, 0  ;;  %v353_v7 = vld [vmem:[%s3866_s19 + $0x8] sm:$0xff]  ;;  %v3305_v9 = vld [vmem:[%s4814_s2] sm:$0xff]   ;;  %v354_v10 = vld [vmem:[%s3866_s19 + $0x10] sm:$0xff]  ;;  %s3052_s21 = sshll.u32 %s3747_s28, 1  ;;  %vm1697_vm3 = vcmask 130112  }
  0x5c   : > { %v479_v4 = vand.u32 %v3303_v3, %v477_v2  ;;  %v384_v8 = vpack.c.bf16 %v353_v7, %v352_v6  ;;  %v355_v11 = vld [vmem:[%s3866_s19 + $0x18] sm:$0xff]  ;;  %v356_v12 = vld [vmem:[%s3866_s19 + $0x20] sm:$0xff]  ;;  %v357_v13 = vld [vmem:[%s3866_s19 + $0x28] sm:$0xff]  ;;  %v3682_v7 = vmov 0   ;;  %p345_p5 = scmp.lt.s32.totalorder %s3052_s21, 3  ;;  %vm1834_vm4 = vcmask 1041409  }
  0x5d   : > { %v385_v14 = vpack.c.bf16 %v355_v11, %v354_v10  ;;  %v386_v15 = vpack.c.bf16 %v357_v13, %v356_v12  ;;  %v3306_v16 = vld [vmem:[#allocation5 + $0x70] ss:$8 sps:$4 sm:$0xff]   ;;  %v3308_v17 = vld [vmem:[#allocation5 + $0x74] ss:$8 sps:$4 sm:$0xff]   ;;  %v3311_v20 = vld [vmem:[#allocation5 + $0x64] ss:$8 sps:$4 sm:$0xff]   ;;  %836 = vmatprep.mubr.bf16.mxu1 %v3682_v7  ;;  %3301 = vset.pattern.permute.xlu0 %v3682_v7 }
  0x5e   : > { %3139 = vmatprep.subr.bf16.mxu0 %v479_v4  ;;  %3145 = vmatprep.mubr.msk.bf16.mxu0 %vm425_vm2, %v384_v8  ;;  %v358_v18 = vld [vmem:[%s3866_s19 + $0x30] sm:$0xff]  ;;  %v359_v19 = vld [vmem:[%s3866_s19 + $0x38] sm:$0xff]  ;;  %v360_v21 = vld [vmem:[%s3866_s19 + $0x40] sm:$0xff]  ;;  %v1318_v8 = vlaneseq  ;;  %s4921_s21 = smov (!%p345_p5, %s3052_s21), 3  ;;  %vm1836_vm5 = vcmask 1042434   ;;  %vm1838_vm6 = vcmask 1043459  }
  0x5f   : > { %3140 = vmatpush3.bf16.msra.mxu0 %v479_v4  ;;  %v3309_v22 = vld [vmem:[#allocation5 + $0x60] ss:$8 sps:$4 sm:$0xff]   ;;  %v3314_v24 = vld [vmem:[#allocation5 + $0x54] ss:$8 sps:$4 sm:$0xff]   ;;  %3212 = vmatprep.subr.bf16.mxu1 %v3308_v17  ;;  %v387_v25 = vpack.c.bf16 %v359_v19, %v358_v18  ;;  %v3312_v27 = vld [vmem:[#allocation5 + $0x50] ss:$8 sps:$4 sm:$0xff]  }
  0x60   : > { %3141 = vmatprep.subr.bf16.mxu0 %v3304_v5  ;;  %v361_v23 = vld [vmem:[%s3866_s19 + $0x48] sm:$0xff]  ;;  %3220 = vmatpush1.bf16.msra.mxu1 %v3306_v16  ;;  %v362_v29 = vld [vmem:[%s3866_s19 + $0x50] sm:$0xff]  ;;  %v363_v30 = vld [vmem:[%s3866_s19 + $0x58] sm:$0xff]  ;;  %v1687_v10 = vand.u32 127, %v1318_v8  ;;  %s3053_s13 = sshll.u32 %s4921_s21, 3  ;;  %vm1840_vm7 = vcmask 1044484  }
  0x61   : > { %3213 = vmatprep.subr.bf16.mxu1 %v3311_v20  ;;  %v388_v26 = vpack.c.bf16 %v361_v23, %v360_v21  ;;  %v3317_v28 = vld [vmem:[#allocation5 + $0x44] ss:$8 sps:$4 sm:$0xff]   ;;  %v3315_v31 = vld [vmem:[#allocation5 + $0x40] ss:$8 sps:$4 sm:$0xff]   ;;  %v3320_v34 = vld [vmem:[#allocation5 + $0x34] ss:$8 sps:$4 sm:$0xff]   ;;  %v389_v35 = vpack.c.bf16 %v363_v30, %v362_v29  ;;  %3302 = vset.pattern.permute.xlu1 %v3682_v7  ;;  %s348_s18 = scalar_lea.vmem %s4813_s1, %s3053_s13 }
  0x62   : > { %v364_v32 = vld [vmem:[%s3866_s19 + $0x60] sm:$0xff]  ;;  %v365_v33 = vld [vmem:[%s3866_s19 + $0x68] sm:$0xff]  ;;  %v3318_v37 = vld [vmem:[#allocation5 + $0x30] ss:$8 sps:$4 sm:$0xff]   ;;  %v1692_v13 = vadd.s32 4294967288, %v1687_v10  ;;  %vm1842_vm8 = vcmask 1045509  }
  0x63   : > { %3142 = vmatpush3.bf16.msra.mxu0 %v3304_v5  ;;  %v390_v36 = vpack.c.bf16 %v365_v33, %v364_v32  ;;  %v3323_v38 = vld [vmem:[#allocation5 + $0x24] ss:$8 sps:$4 sm:$0xff]   ;;  %v366_v39 = vld [vmem:[%s3866_s19 + $0x70] sm:$0xff]  ;;  %v367_v40 = vld [vmem:[%s3866_s19 + $0x78] sm:$0xff]  ;;  %vm1844_vm9 = vcmask 1046534   ;;  %vm1846_vm10 = vcmask 1047559  }
  0x64   : > { %3143 = vmatprep.subr.bf16.mxu0 %v3305_v9  ;;  %3221 = vmatpush1.bf16.msra.mxu1 %v3309_v22  ;;  %v3321_v41 = vld [vmem:[#allocation5 + $0x20] ss:$8 sps:$4 sm:$0xff]   ;;  %v391_v44 = vpack.c.bf16 %v367_v40, %v366_v39  ;;  %v370_v46 = vld [vmem:[%s3866_s19 + $0x90] sm:$0xff]  ;;  %v371_v47 = vld [vmem:[%s3866_s19 + $0x98] sm:$0xff]  ;;  %vm1857_vm11 = vcmask 130048   ;;  %s3051_s29 = sshll.u32 %s3862_s17, 4 }
  0x65   : > { %3214 = vmatprep.subr.bf16.mxu1 %v3314_v24  ;;  %v368_v42 = vld [vmem:[%s3866_s19 + $0x80] sm:$0xff]  ;;  %v369_v43 = vld [vmem:[%s3866_s19 + $0x88] sm:$0xff]  ;;  %v393_v50 = vpack.c.bf16 %v371_v47, %v370_v46  ;;  %v374_v52 = vld [vmem:[%s3866_s19 + $0xb0] sm:$0xff]  ;;  %s342_s14 = scalar_lea.vmem [#allocation8], %s3051_s29  ;;  %s2921_s9 = scalar_lea.sflag [#allocation4], %s3862_s17 }
  0x66   : > { %v392_v45 = vpack.c.bf16 %v369_v43, %v368_v42  ;;  %v372_v48 = vld [vmem:[%s3866_s19 + $0xa0] sm:$0xff]  ;;  %v373_v49 = vld [vmem:[%s3866_s19 + $0xa8] sm:$0xff]  ;;  %v375_v53 = vld [vmem:[%s3866_s19 + $0xb8] sm:$0xff]  ;;  %s2934_s16 = sshll.u32 %s342_s14, 4  ;;  %p4913_p7 = scmp.ne.s32.totalorder %s4867_s11, 0  ;;  %s4764_s16 = int_to_ptr.vmem [resolvable:$true] %s2934_s16 }
  0x67   : > { %3144 = vmatpush3.bf16.msra.mxu0 %v3305_v9  ;;  %v394_v51 = vpack.c.bf16 %v373_v49, %v372_v48  ;;  %v376_v54 = vld [vmem:[%s3866_s19 + $0xc0] sm:$0xff]  ;;  %v377_v55 = vld [vmem:[%s3866_s19 + $0xc8] sm:$0xff]  ;;  %v395_v56 = vpack.c.bf16 %v375_v53, %v374_v52  ;;  %v378_v58 = vld [vmem:[%s3866_s19 + $0xd0] sm:$0xff]  ;;  %v3938_v9 = vshrl.u32 %v1318_v8, 7  ;;  %s3606_s20 = scalar_lea.vmem %s4764_s16, 256 }
  0x68   : > { %754 = vmatprep.subr.bf16.mxu0 %v3308_v17  ;;  %3222 = vmatpush1.bf16.msra.mxu1 %v3312_v27  ;;  %v396_v57 = vpack.c.bf16 %v377_v55, %v376_v54  ;;  %v379_v59 = vld [vmem:[%s3866_s19 + $0xd8] sm:$0xff]  ;;  %v380_v60 = vld [vmem:[%s3866_s19 + $0xe0] sm:$0xff]  ;;  %v381_v61 = vld [vmem:[%s3866_s19 + $0xe8] sm:$0xff]  ;;  %p3607_p2 = scmp.ne.s32.totalorder %s4764_s16, %s3606_s20 }
  0x69   : > { %3215 = vmatprep.subr.bf16.mxu1 %v3317_v28  ;;  %v397_v62 = vpack.c.bf16 %v379_v59, %v378_v58  ;;  %v398_v63 = vpack.c.bf16 %v381_v61, %v380_v60  ;;  %v382_v0 = vld [vmem:[%s3866_s19 + $0xf0] sm:$0xff]  ;;  %v383_v1 = vld [vmem:[%s3866_s19 + $0xf8] sm:$0xff]  ;;  %v3329_v5 = vld [vmem:[#allocation5 + $0x4] ss:$8 sps:$4 sm:$0xff]   ;;  %v3941_v11 = vsub.s32 0, %v3938_v9  ;;  %v3944_v12 = vsub.s32 %v1687_v10, %v3938_v9 }
  0x6a   : > { %3146 = vmatmul.mubr.msk.bf16.vlgmr.msra.gmra.mxu0 %vm425_vm2, %v385_v14  ;;  %v399_v2 = vpack.c.bf16 %v383_v1, %v382_v0  ;;  %v3326_v3 = vld [vmem:[#allocation5 + $0x14] ss:$8 sps:$4 sm:$0xff]   ;;  %v3324_v4 = vld [vmem:[#allocation5 + $0x10] ss:$8 sps:$4 sm:$0xff]   ;;  %v3327_v6 = vld [vmem:[#allocation5] ss:$8 sps:$4 sm:$0xff]   ;;  %v3950_v14 = vsub.s32 %v1692_v13, %v3938_v9  ;;  %p3608_p12 = pnand %p3607_p2, %p4913_p7 }
  0x6b   : > { %3149 = vmatprep.mubr.msk.bf16.mxu0 %vm425_vm2, %v386_v15  ;;  %755 = vmatpush1.bf16.msra.mxu0 %v3306_v16  ;;  %v3953_v15 = vsub.s32 1, %v3938_v9  ;;  %v3956_v16 = vsub.s32 2, %v3938_v9  ;;  %v3958_v17 = vld [vmem:[%s348_s18] sm:$0xff]  ;;  %v3966_v21 = vld [vmem:[%s348_s18 + $0x8] sm:$0xff]  ;;  %v3980_v30 = vsub.s32 4, %v3938_v9  ;;  %v3999_v42 = vsub.s32 5, %v3938_v9 }
  0x6c   : > { %756 = vmatprep.subr.bf16.mxu0 %v3311_v20  ;;  %3223 = vmatpush1.bf16.msra.mxu1 %v3315_v31  ;;  %v1321_v18 = vrot.slane %v3958_v17, %v3941_v11  ;;  %v4014_v55 = vsub.s32 6, %v3938_v9  ;;  %s3101_s18 = sshll.u32 %s3747_s28, 8  ;;  %p3609_p13 = pneg %p3608_p12 }
  0x6d   : > { %3216 = vmatprep.subr.bf16.mxu1 %v3320_v34  ;;  %v1332_v19 = vrot.slane %v3958_v17, %v3953_v15  ;;  %v1343_v20 = vrot.slane %v3958_v17, %v3956_v16  ;;  %v1420_v23 = vrot.slane %v3966_v21, %v3953_v15  ;;  %v1431_v29 = vrot.slane %v3966_v21, %v3956_v16  ;;  %s4769_s19 = scalar_lea.hbm %s4819_s7, %s3101_s18  ;;  %s3683_s28 = smov [#allocation8]  }
  0x6e   : > { %1327 = vbcast.lane.b32.xlu1 %v1321_v18, 264  ;;  %1323 = vbcast.lane.b32.xlu0 %v1321_v18, 256  ;;  %v1376_v47 = vrot.slane %v3958_v17, %v3999_v42  ;;  %v1453_v54 = vrot.slane %v3966_v21, %v3980_v30  ;;  %v1387_v61 = vrot.slane %v3958_v17, %v4014_v55  ;;  %s3610_s30 = sshll.u32 %s3683_s28, 4  ;;  %s3611_s30 = int_to_ptr.vmem [resolvable:$false] %s3610_s30 }
  0x6f   : > { %757 = vmatpush1.bf16.msra.mxu0 %v3309_v22  ;;  %v1409_v22 = vrot.slane %v3966_v21, %v3941_v11  ;;  %v1464_v1 = vrot.slane %v3966_v21, %v3999_v42  ;;  %s3612_s22 = scalar_lea.vmem %s3611_s30, 512  ;;  %p3613_p0 = scmp.lt.s32.totalorder %s4764_s16, %s3611_s30 }
  0x70   : > { %758 = vmatprep.subr.bf16.mxu0 %v3314_v24  ;;  %3224 = vmatpush1.bf16.msra.mxu1 %v3318_v37  ;;  %v3973_v24 = vsub.s32 3, %v3938_v9  ;;  %p3614_p10 = scmp.lt.s32.totalorder %s3612_s22, %s3606_s20 }
  0x71   : > { %3217 = vmatprep.subr.bf16.mxu1 %v3323_v38 }
  0x72   : > { %3150 = vmatmul.mubr.msk.bf16.gmra.mxu0 %vm425_vm2, %v387_v25  ;;  %1334 = vbcast.lane.b32.xlu1 %v1332_v19, 256  ;;  %p3615_p3 = por %p3614_p10, %p3613_p0 }
  0x73   : > { %3153 = vmatprep.mubr.msk.bf16.mxu0 %vm425_vm2, %v388_v26  ;;  %759 = vmatpush1.bf16.msra.mxu0 %v3312_v27  ;;  %v1354_v26 = vrot.slane %v3958_v17, %v3973_v24 }
  0x74   : > { %760 = vmatprep.subr.bf16.mxu0 %v3317_v28  ;;  %3225 = vmatpush1.bf16.msra.mxu1 %v3321_v41  ;;  %p3616_p11 = pnand %p3615_p3, %p3609_p13 }
  0x75   : > { %3218 = vmatprep.subr.bf16.mxu1 %v3326_v3  ;;  %1345 = vbcast.lane.b32.xlu0 %v1343_v20, 256 }
  0x76   : > { %1338 = vbcast.lane.b32.xlu1 %v1332_v19, 264 }
  0x77   : > { %761 = vmatpush1.bf16.msra.mxu0 %v3315_v31  ;;  %v3985_v31 = vld [vmem:[%s4816_s4] ss:$0 sm:$0xff] }
  0x78   : > { %762 = vmatprep.subr.bf16.mxu0 %v3320_v34  ;;  %3226 = vmatpush1.bf16.msra.mxu1 %v3324_v4 }
  0x79   : > { %3219 = vmatprep.subr.bf16.mxu1 %v3329_v5  ;;  %1411 = vbcast.lane.b32.xlu0 %v1409_v22, 256 }
  0x7a   : > { %3154 = vmatmul.mubr.msk.bf16.gmra.mxu0 %vm425_vm2, %v389_v35  ;;  %1349 = vbcast.lane.b32.xlu1 %v1343_v20, 264 }
  0x7b   : > { %3157 = vmatprep.mubr.msk.bf16.mxu0 %vm425_vm2, %v390_v36  ;;  %763 = vmatpush1.bf16.msra.mxu0 %v3318_v37  ;;  %v1365_v37 = vrot.slane %v3958_v17, %v3980_v30 }
  0x7c   : > { %764 = vmatprep.subr.bf16.mxu0 %v3323_v38  ;;  %3227 = vmatpush1.bf16.msra.mxu1 %v3327_v6 }
  0x7d   : > { %1422 = vbcast.lane.b32.xlu0 %v1420_v23, 256 }
  0x7e   : > { %1415 = vbcast.lane.b32.xlu1 %v1409_v22, 264  ;;  %v1475_v22 = vrot.slane %v3966_v21, %v4014_v55 }
  0x7f   : > { %765 = vmatpush1.bf16.msra.mxu0 %v3321_v41  ;;  %v1442_v41 = vrot.slane %v3966_v21, %v3973_v24 }
  0x80   : > { %766 = vmatprep.subr.bf16.mxu0 %v3326_v3 }
  0x81   : > { %1356 = vbcast.lane.b32.xlu0 %v1354_v26, 256 }
  0x82   : > { %3158 = vmatmul.mubr.msk.bf16.gmra.mxu0 %vm425_vm2, %v391_v44  ;;  %1426 = vbcast.lane.b32.xlu1 %v1420_v23, 264 }
  0x83   : > { %3161 = vmatprep.mubr.msk.bf16.mxu0 %vm425_vm2, %v392_v45  ;;  %767 = vmatpush1.bf16.msra.mxu0 %v3324_v4 }
  0x84   : > { %768 = vmatprep.subr.bf16.mxu0 %v3329_v5 }
  0x85   : > { %1433 = vbcast.lane.b32.xlu0 %v1431_v29, 256 }
  0x86   : > { %1360 = vbcast.lane.b32.xlu1 %v1354_v26, 264 }
  0x87   : > { %769 = vmatpush1.bf16.msra.mxu0 %v3327_v6 }
  0x89   : > { %1367 = vbcast.lane.b32.xlu0 %v1365_v37, 256 }
  0x8a   : > { %3162 = vmatmul.mubr.msk.bf16.gmra.mxu0 %vm425_vm2, %v393_v50  ;;  %1437 = vbcast.lane.b32.xlu1 %v1431_v29, 264 }
  0x8b   : > { %3165 = vmatprep.mubr.msk.bf16.mxu0 %vm425_vm2, %v394_v51 }
  0x8d   : > { %1444 = vbcast.lane.b32.xlu0 %v1442_v41, 256 }
  0x8e   : > { %1371 = vbcast.lane.b32.xlu1 %v1365_v37, 264 }
  0x91   : > { %1378 = vbcast.lane.b32.xlu0 %v1376_v47, 256 }
  0x92   : > { %3166 = vmatmul.mubr.msk.bf16.gmra.mxu0 %vm425_vm2, %v395_v56  ;;  %1448 = vbcast.lane.b32.xlu1 %v1442_v41, 264 }
  0x93   : > { %3169 = vmatprep.mubr.msk.bf16.mxu0 %vm425_vm2, %v396_v57 }
  0x95   : > { %1455 = vbcast.lane.b32.xlu0 %v1453_v54, 256 }
  0x96   : > { %1382 = vbcast.lane.b32.xlu1 %v1376_v47, 264 }
  0x99   : > { %1389 = vbcast.lane.b32.xlu0 %v1387_v61, 256 }
  0x9a   : > { %3170 = vmatmul.mubr.msk.bf16.gmra.mxu0 %vm425_vm2, %v397_v62  ;;  %1459 = vbcast.lane.b32.xlu1 %v1453_v54, 264 }
  0x9b   : > { %3173 = vmatprep.mubr.msk.bf16.mxu0 %vm425_vm2, %v398_v63 }
  0x9d   : > { %1466 = vbcast.lane.b32.xlu0 %v1464_v1, 256 }
  0x9e   : > { %1393 = vbcast.lane.b32.xlu1 %v1387_v61, 264 }
  0xa2   : > { %3174 = vmatmul.mubr.msk.bf16.gmra.mxu0 %vm425_vm2, %v399_v2  ;;  %v4031_v2 = vsub.s32 7, %v3938_v9  ;;  %1470 = vbcast.lane.b32.xlu1 %v1464_v1, 264 }
  0xa3   : > { %786 = vmatprep.mubr.bf16.mxu0 %v3682_v7 }
  0xa4   : > { %v1398_v18 = vrot.slane %v3958_v17, %v4031_v2 }
  0xa6   : > { %1400 = vbcast.lane.b32.xlu0 %v1398_v18, 256  ;;  %1404 = vbcast.lane.b32.xlu1 %v1398_v18, 264 }
  0xaa   : > { %1477 = vbcast.lane.b32.xlu0 %v1475_v22, 256  ;;  %1481 = vbcast.lane.b32.xlu1 %v1475_v22, 264 }
 0x12a   : > { %v3147_v25 = vpop.f32.mrf.mxu0 }
 0x12b   : > { %v524_v44 = vadd.f32 %v3147_v25, %v3985_v31 }
 0x12c   : > { %v515_v27 = vpop.f32.mrf.mxu0 }
 0x12d   : > { %v516_v33 = vadd.f32 %v3985_v31, %v515_v27 }
 0x12e   : > { %v3148_v28 = vpop.f32.mrf.mxu0 }
 0x12f   : > { %v527_v40 = vadd.f32 %v3148_v28, %v3985_v31  ;;  %v1486_v28 = vrot.slane %v3966_v21, %v4031_v2 }
 0x130   : > { %v518_v32 = vpop.f32.mrf.mxu0 }
 0x131   : > { %v519_v34 = vadd.f32 %v3985_v31, %v518_v32  ;;  %v4002_v46 = vpack.c.bf16 %v527_v40, %v524_v44  ;;  %1488 = vbcast.lane.b32.xlu0 %v1486_v28, 256  ;;  %1492 = vbcast.lane.b32.xlu1 %v1486_v28, 264 }
 0x132   : > { %v3151_v35 = vpop.f32.mrf.mxu0 }
 0x133   : > { %v3989_v36 = vpack.c.bf16 %v519_v34, %v516_v33  ;;  %4876 = vst [vmem:[#allocation13_spill] sm:$0xff] %v4002_v46  ;;  %v540_v3 = vadd.f32 %v3151_v35, %v3985_v31 }
 0x134   : > { %v531_v38 = vpop.f32.mrf.mxu0 }
 0x135   : > { %4875 = vst [vmem:[#allocation12_spill] sm:$0xff] %v3989_v36  ;;  %787 = vmatmul.mubr.bf16.vlgmr.msra.gmra.mxu0 %v3989_v36  ;;  %v532_v56 = vadd.f32 %v3985_v31, %v531_v38 }
 0x136   : > { %v3152_v39 = vpop.f32.mrf.mxu0  ;;  %796 = vmatprep.mubr.bf16.mxu0 %v3682_v7 }
 0x137   : > { %v543_v63 = vadd.f32 %v3152_v39, %v3985_v31 }
 0x138   : > { %v534_v43 = vpop.f32.mrf.mxu0 }
 0x139   : > { %v535_v50 = vadd.f32 %v3985_v31, %v534_v43  ;;  %v4036_v8 = vpack.c.bf16 %v543_v63, %v540_v3 }
 0x13a   : > { %v3155_v45 = vpop.f32.mrf.mxu0 }
 0x13b   : > { %v556_v51 = vadd.f32 %v3155_v45, %v3985_v31  ;;  %v4019_v59 = vpack.c.bf16 %v535_v50, %v532_v56  ;;  %4879 = vst [vmem:[#allocation16_spill] sm:$0xff] %v4036_v8 }
 0x13c   : > { %v547_v48 = vpop.f32.mrf.mxu0 }
 0x13d   : > { %797 = vmatmul.mubr.bf16.gmra.mxu0 %v4002_v46  ;;  %4878 = vst [vmem:[#allocation15_spill] sm:$0xff] %v4019_v59  ;;  %v548_v17 = vadd.f32 %v3985_v31, %v547_v48 }
 0x13e   : > { %v3156_v49 = vpop.f32.mrf.mxu0  ;;  %806 = vmatprep.mubr.bf16.mxu0 %v3682_v7 }
 0x13f   : > { %v559_v52 = vadd.f32 %v3156_v49, %v3985_v31 }
 0x140   : > { %v550_v53 = vpop.f32.mrf.mxu0 }
 0x141   : > { %v4017_v57 = vpack.c.bf16 %v559_v52, %v556_v51  ;;  %v551_v9 = vadd.f32 %v3985_v31, %v550_v53 }
 0x142   : > { %v3159_v58 = vpop.f32.mrf.mxu0 }
 0x143   : > { %4877 = vst [vmem:[#allocation14_spill] sm:$0xff] %v4017_v57  ;;  %837 = vmatmul.mubr.bf16.vlgmr.msra.gmra.mxu1 %v4017_v57  ;;  %v572_v23 = vadd.f32 %v3159_v58, %v3985_v31  ;;  %v4052_v25 = vpack.c.bf16 %v551_v9, %v548_v17 }
 0x144   : > { %v563_v60 = vpop.f32.mrf.mxu0  ;;  %846 = vmatprep.mubr.bf16.mxu1 %v3682_v7 }
 0x145   : > { %807 = vmatmul.mubr.bf16.gmra.mxu0 %v4019_v59  ;;  %v564_v4 = vadd.f32 %v3985_v31, %v563_v60  ;;  %4881 = vst [vmem:[#allocation18_spill] sm:$0xff] %v4052_v25 }
 0x146   : > { %v3160_v62 = vpop.f32.mrf.mxu0  ;;  %816 = vmatprep.mubr.bf16.mxu0 %v3682_v7 }
 0x147   : > { %v575_v19 = vadd.f32 %v3160_v62, %v3985_v31 }
 0x148   : > { %v566_v0 = vpop.f32.mrf.mxu0 }
 0x149   : > { %v567_v5 = vadd.f32 %v3985_v31, %v566_v0  ;;  %v4054_v26 = vpack.c.bf16 %v575_v19, %v572_v23  ;;  %v4111_v19 = vld [vmem:[%s4816_s4 + $0x2] ss:$0 sm:$0xff] }
 0x14a   : > { %v3163_v6 = vpop.f32.mrf.mxu0 }
 0x14b   : > { %v4038_v10 = vpack.c.bf16 %v567_v5, %v564_v4  ;;  %4882 = vst [vmem:[#allocation19_spill] sm:$0xff] %v4054_v26  ;;  %v588_v21 = vadd.f32 %v3163_v6, %v3985_v31 }
 0x14c   : > { %v579_v13 = vpop.f32.mrf.mxu0 }
 0x14d   : > { %4880 = vst [vmem:[#allocation17_spill] sm:$0xff] %v4038_v10  ;;  %817 = vmatmul.mubr.bf16.gmra.mxu0 %v4036_v8  ;;  %847 = vmatmul.mubr.bf16.gmra.mxu1 %v4038_v10  ;;  %v580_v29 = vadd.f32 %v3985_v31, %v579_v13 }
 0x14e   : > { %826 = vmatprep.mubr.bf16.mxu0 %v3682_v7  ;;  %856 = vmatprep.mubr.bf16.mxu1 %v3682_v7  ;;  %v3164_v20 = vpop.f32.mrf.mxu0 }
 0x14f   : > { %v591_v37 = vadd.f32 %v3164_v20, %v3985_v31 }
 0x150   : > { %v582_v27 = vpop.f32.mrf.mxu0 }
 0x151   : > { %v583_v32 = vadd.f32 %v3985_v31, %v582_v27  ;;  %v4069_v39 = vpack.c.bf16 %v591_v37, %v588_v21 }
 0x152   : > { %v3167_v33 = vpop.f32.mrf.mxu0 }
 0x153   : > { %v4063_v34 = vpack.c.bf16 %v583_v32, %v580_v29  ;;  %4884 = vst [vmem:[#allocation21_spill] sm:$0xff] %v4069_v39  ;;  %v604_v48 = vadd.f32 %v3167_v33, %v3985_v31 }
 0x154   : > { %v595_v35 = vpop.f32.mrf.mxu0 }
 0x155   : > { %827 = vmatmul.mubr.bf16.gmra.mxu0 %v4052_v25  ;;  %857 = vmatmul.mubr.bf16.gmra.mxu1 %v4054_v26  ;;  %4883 = vst [vmem:[#allocation20_spill] sm:$0xff] %v4063_v34  ;;  %v596_v41 = vadd.f32 %v3985_v31, %v595_v35 }
 0x156   : > { %866 = vmatprep.mubr.bf16.mxu1 %v3682_v7  ;;  %v3168_v38 = vpop.f32.mrf.mxu0 }
 0x157   : > { %v607_v49 = vadd.f32 %v3168_v38, %v3985_v31 }
 0x158   : > { %v598_v40 = vpop.f32.mrf.mxu0 }
 0x159   : > { %v599_v43 = vadd.f32 %v3985_v31, %v598_v40  ;;  %v4081_v51 = vpack.c.bf16 %v607_v49, %v604_v48 }
 0x15a   : > { %v3171_v44 = vpop.f32.mrf.mxu0 }
 0x15b   : > { %v4075_v45 = vpack.c.bf16 %v599_v43, %v596_v41  ;;  %4886 = vst [vmem:[#allocation23_spill] sm:$0xff] %v4081_v51  ;;  %v620_v61 = vadd.f32 %v3171_v44, %v3985_v31 }
 0x15c   : > { %v611_v47 = vpop.f32.mrf.mxu0 }
 0x15d   : > { %867 = vmatmul.mubr.bf16.gmra.mxu1 %v4063_v34  ;;  %4885 = vst [vmem:[#allocation22_spill] sm:$0xff] %v4075_v45  ;;  %v612_v53 = vadd.f32 %v3985_v31, %v611_v47 }
 0x15e   : > { %876 = vmatprep.mubr.bf16.mxu1 %v3682_v7  ;;  %v3172_v50 = vpop.f32.mrf.mxu0 }
 0x15f   : > { %v623_v62 = vadd.f32 %v3172_v50, %v3985_v31 }
 0x160   : > { %v614_v52 = vpop.f32.mrf.mxu0 }
 0x161   : > { %v615_v54 = vadd.f32 %v3985_v31, %v614_v52  ;;  %v4093_v0 = vpack.c.bf16 %v623_v62, %v620_v61 }
 0x162   : > { %v3175_v56 = vpop.f32.mrf.mxu0 }
 0x163   : > { %v4087_v58 = vpack.c.bf16 %v615_v54, %v612_v53  ;;  %4888 = vst [vmem:[#allocation25_spill] sm:$0xff] %v4093_v0  ;;  %v636_v6 = vadd.f32 %v3175_v56, %v3985_v31 }
 0x164   : > { %v627_v60 = vpop.f32.mrf.mxu0 }
 0x165   : > { %877 = vmatmul.mubr.bf16.gmra.mxu1 %v4069_v39  ;;  %4887 = vst [vmem:[#allocation24_spill] sm:$0xff] %v4087_v58  ;;  %v628_v3 = vadd.f32 %v3985_v31, %v627_v60 }
 0x166   : > { %886 = vmatprep.mubr.bf16.mxu1 %v3682_v7  ;;  %v3176_v63 = vpop.f32.mrf.mxu0 }
 0x167   : > { %v639_v13 = vadd.f32 %v3176_v63, %v3985_v31 }
 0x168   : > { %v630_v1 = vpop.f32.mrf.mxu0 }
 0x169   : > { %v631_v4 = vadd.f32 %v3985_v31, %v630_v1  ;;  %v4105_v18 = vpack.c.bf16 %v639_v13, %v636_v6 }
 0x16b   : > { %v4099_v5 = vpack.c.bf16 %v631_v4, %v628_v3  ;;  %4890 = vst [vmem:[#allocation27_spill] sm:$0xff] %v4105_v18 }
 0x16d   : > { %887 = vmatmul.mubr.bf16.gmra.mxu1 %v4075_v45  ;;  %4889 = vst [vmem:[#allocation26_spill] sm:$0xff] %v4099_v5 }
 0x16e   : > { %896 = vmatprep.mubr.bf16.mxu1 %v3682_v7 }
 0x175   : > { %897 = vmatmul.mubr.bf16.gmra.mxu1 %v4081_v51 }
 0x176   : > { %906 = vmatprep.mubr.bf16.mxu1 %v3682_v7 }
 0x17d   : > { %907 = vmatmul.mubr.bf16.gmra.mxu1 %v4087_v58 }
 0x17e   : > { %916 = vmatprep.mubr.bf16.mxu1 %v3682_v7 }
 0x185   : > { %917 = vmatmul.mubr.bf16.gmra.mxu1 %v4093_v0 }
 0x186   : > { %926 = vmatprep.mubr.bf16.mxu1 %v3682_v7 }
 0x18d   : > { %927 = vmatmul.mubr.bf16.gmra.mxu1 %v4099_v5 }
 0x18e   : > { %936 = vmatprep.mubr.bf16.mxu1 %v3682_v7  ;;  %v4117_v7 = vld [vmem:[%s4816_s4 + $0x1] ss:$0 sm:$0xff] }
 0x195   : > { %937 = vmatmul.mubr.bf16.gmra.mxu1 %v4105_v18 }
 0x1f5   : > { %v788_v9 = vpop.f32.mrf.mxu0 }
 0x1f6   : > { %v953_v28 = vadd.f32 %v4117_v7, %v788_v9 }
 0x1f7   : > { %v790_v20 = vpop.f32.mrf.mxu0 }
 0x1f8   : > { %v1021_v22 = vadd.f32 %v4111_v19, %v790_v20 }
 0x1f9   : > { %v792_v17 = vpop.f32.mrf.mxu0 }
 0x1fa   : > { %v1053_v31 = vmul.f32 0.5, %v1021_v22  ;;  %v954_v21 = vadd.f32 %v4117_v7, %v792_v17 }
 0x1fb   : > { %v794_v23 = vpop.f32.mrf.mxu0 }
 0x1fc   : > { %3330 = vtanh.f32 %v1053_v31  ;;  %v1022_v27 = vadd.f32 %v4111_v19, %v794_v23 }
 0x1fd   : > { %v798_v29 = vpop.f32.mrf.mxu0 }
 0x1fe   : > { %v1054_v32 = vmul.f32 0.5, %v1022_v27  ;;  %v955_v40 = vadd.f32 %v4117_v7, %v798_v29 }
 0x1ff   : > { %v800_v33 = vpop.f32.mrf.mxu0 }
 0x200   : > { %3332 = vtanh.f32 %v1054_v32  ;;  %v1023_v35 = vadd.f32 %v4111_v19, %v800_v33 }
 0x201   : > { %3334 = vtanh.f32 %v953_v28  ;;  %v802_v37 = vpop.f32.mrf.mxu0 }
 0x202   : > { %v1055_v38 = vmul.f32 0.5, %v1023_v35  ;;  %v956_v47 = vadd.f32 %v4117_v7, %v802_v37  ;;  %v4138_v37 = vld [vmem:[%s4816_s4 + $0x3] ss:$0 sm:$0xff] }
 0x203   : > { %v804_v41 = vpop.f32.mrf.mxu0  ;;  %v838_v43 = vpop.f32.mrf.mxu1 }
 0x204   : > { %3336 = vtanh.f32 %v1055_v38  ;;  %v1024_v44 = vadd.f32 %v4111_v19, %v804_v41  ;;  %v963_v53 = vadd.f32 %v4117_v7, %v838_v43 }
 0x205   : > { %3338 = vtanh.f32 %v954_v21  ;;  %v808_v48 = vpop.f32.mrf.mxu0  ;;  %v840_v49 = vpop.f32.mrf.mxu1 }
 0x206   : > { %v1056_v50 = vmul.f32 0.5, %v1024_v44  ;;  %v1031_v52 = vadd.f32 %v4111_v19, %v840_v49  ;;  %3340 = vtanh.f32 %v955_v40  ;;  %v957_v63 = vadd.f32 %v4117_v7, %v808_v48 }
 0x207   : > { %v810_v54 = vpop.f32.mrf.mxu0  ;;  %v842_v56 = vpop.f32.mrf.mxu1 }
 0x208   : > { %3342 = vtanh.f32 %v1056_v50  ;;  %v1063_v60 = vmul.f32 0.5, %v1031_v52  ;;  %v1025_v61 = vadd.f32 %v4111_v19, %v810_v54  ;;  %v964_v13 = vadd.f32 %v4117_v7, %v842_v56 }
 0x209   : > { %v3331_v62 = vpop.eup %3330  ;;  %3344 = vtanh.f32 %v956_v47  ;;  %v812_v1 = vpop.f32.mrf.mxu0 }
 0x20a   : > { %v844_v3 = vpop.f32.mrf.mxu1  ;;  %v1117_v4 = vadd.f32 1.0, %v3331_v62  ;;  %3346 = vtanh.f32 %v1063_v60  ;;  %v1057_v6 = vmul.f32 0.5, %v1025_v61  ;;  %v958_v23 = vadd.f32 %v4117_v7, %v812_v1 }
 0x20b   : > { %3348 = vtanh.f32 %v963_v53  ;;  %v1032_v9 = vadd.f32 %v4111_v19, %v844_v3  ;;  %v814_v20 = vpop.f32.mrf.mxu0 }
 0x20c   : > { %3350 = vtanh.f32 %v1057_v6  ;;  %v1026_v22 = vadd.f32 %v4111_v19, %v814_v20  ;;  %v1149_v17 = vmul.f32 0.5, %v1117_v4 }
 0x20d   : > { %v3333_v31 = vpop.eup %3332  ;;  %3352 = vtanh.f32 %v957_v63  ;;  %v1064_v27 = vmul.f32 0.5, %v1032_v9  ;;  %v818_v28 = vpop.f32.mrf.mxu0 }
 0x20e   : > { %v848_v29 = vpop.f32.mrf.mxu1  ;;  %v3335_v32 = vpop.eup %3334  ;;  %v1118_v33 = vadd.f32 1.0, %v3333_v31  ;;  %3354 = vtanh.f32 %v964_v13  ;;  %v1058_v35 = vmul.f32 0.5, %v1026_v22  ;;  %v959_v21 = vadd.f32 %v4117_v7, %v818_v28 }
 0x20f   : > { %3356 = vtanh.f32 %v1064_v27  ;;  %v965_v38 = vadd.f32 %v4117_v7, %v848_v29  ;;  %v820_v40 = vpop.f32.mrf.mxu0  ;;  %v1181_v43 = vmul.f32 %v3335_v32, %v1149_v17 }
 0x210   : > { %v850_v41 = vpop.f32.mrf.mxu1  ;;  %3358 = vtanh.f32 %v1058_v35  ;;  %v1027_v44 = vadd.f32 %v4111_v19, %v820_v40  ;;  %v1150_v48 = vmul.f32 0.5, %v1118_v33 }
 0x211   : > { %v1033_v47 = vadd.f32 %v4111_v19, %v850_v41  ;;  %v3337_v49 = vpop.eup %3336  ;;  %3360 = vtanh.f32 %v958_v23  ;;  %v822_v50 = vpop.f32.mrf.mxu0  ;;  %v1218_v53 = vmul.f32 %v4138_v37, %v1181_v43 }
 0x212   : > { %v852_v52 = vpop.f32.mrf.mxu1  ;;  %v3339_v54 = vpop.eup %3338  ;;  %v1119_v56 = vadd.f32 1.0, %v3337_v49  ;;  %3362 = vtanh.f32 %v959_v21  ;;  %v1059_v60 = vmul.f32 0.5, %v1027_v44  ;;  %v960_v62 = vadd.f32 %v4117_v7, %v822_v50 }
 0x213   : > { %v1065_v61 = vmul.f32 0.5, %v1033_v47  ;;  %3364 = vtanh.f32 %v965_v38  ;;  %1250 = vadd.xlane.f32.xlu0 %v1218_v53  ;;  %v824_v63 = vpop.f32.mrf.mxu0  ;;  %v1182_v3 = vmul.f32 %v3339_v54, %v1150_v48  ;;  %v3341_v4 = vpop.eup %3340  ;;  %v966_v28 = vadd.f32 %v4117_v7, %v852_v52 }
 0x214   : > { %v854_v1 = vpop.f32.mrf.mxu1  ;;  %3366 = vtanh.f32 %v1059_v60  ;;  %v1028_v6 = vadd.f32 %v4111_v19, %v824_v63  ;;  %v1151_v9 = vmul.f32 0.5, %v1119_v56 }
 0x215   : > { %v1034_v13 = vadd.f32 %v4111_v19, %v854_v1  ;;  %v3343_v20 = vpop.eup %3342  ;;  %3368 = vtanh.f32 %v1065_v61  ;;  %v828_v22 = vpop.f32.mrf.mxu0  ;;  %v1219_v31 = vmul.f32 %v4138_v37, %v1182_v3 }
 0x216   : > { %v858_v17 = vpop.f32.mrf.mxu1  ;;  %v3345_v23 = vpop.eup %3344  ;;  %v1120_v27 = vadd.f32 1.0, %v3343_v20  ;;  %v1060_v29 = vmul.f32 0.5, %v1028_v6  ;;  %3370 = vtanh.f32 %v960_v62  ;;  %v961_v35 = vadd.f32 %v4117_v7, %v828_v22 }
 0x217   : > { %v1066_v32 = vmul.f32 0.5, %v1034_v13  ;;  %v3347_v33 = vpop.eup %3346  ;;  %1252 = vadd.xlane.f32.xlu0 %v1219_v31  ;;  %v830_v21 = vpop.f32.mrf.mxu0  ;;  %v1183_v40 = vmul.f32 %v3341_v4, %v1151_v9  ;;  %v967_v63 = vadd.f32 %v4117_v7, %v858_v17 }
 0x218   : > { %v860_v38 = vpop.f32.mrf.mxu1  ;;  %v3349_v41 = vpop.eup %3348  ;;  %v1127_v43 = vadd.f32 1.0, %v3347_v33  ;;  %3372 = vtanh.f32 %v1060_v29  ;;  %v1029_v44 = vadd.f32 %v4111_v19, %v830_v21  ;;  %v1152_v53 = vmul.f32 0.5, %v1120_v27 }
 0x219   : > { %v1035_v47 = vadd.f32 %v4111_v19, %v860_v38  ;;  %v3351_v48 = vpop.eup %3350  ;;  %3374 = vtanh.f32 %v1066_v32  ;;  %v832_v49 = vpop.f32.mrf.mxu0  ;;  %v1220_v52 = vmul.f32 %v4138_v37, %v1183_v40 }
 0x21a   : > { %v862_v50 = vpop.f32.mrf.mxu1  ;;  %v3353_v54 = vpop.eup %3352  ;;  %v1121_v56 = vadd.f32 1.0, %v3351_v48  ;;  %3376 = vtanh.f32 %v966_v28  ;;  %v1061_v60 = vmul.f32 0.5, %v1029_v44  ;;  %v1184_v4 = vmul.f32 %v3345_v23, %v1152_v53 }
 0x21b   : > { %v1067_v61 = vmul.f32 0.5, %v1035_v47  ;;  %v3355_v62 = vpop.eup %3354  ;;  %3378 = vtanh.f32 %v961_v35  ;;  %1254 = vadd.xlane.f32.xlu1 %v1220_v52  ;;  %v834_v1 = vpop.f32.mrf.mxu0  ;;  %v1159_v20 = vmul.f32 0.5, %v1127_v43  ;;  %v962_v33 = vadd.f32 %v4117_v7, %v832_v49 }
 0x21c   : > { %v864_v3 = vpop.f32.mrf.mxu1  ;;  %v3357_v6 = vpop.eup %3356  ;;  %3380 = vtanh.f32 %v1061_v60  ;;  %v1030_v13 = vadd.f32 %v4111_v19, %v834_v1  ;;  %v1221_v28 = vmul.f32 %v4138_v37, %v1184_v4  ;;  %v1153_v29 = vmul.f32 0.5, %v1121_v56 }
 0x21d   : > { %v1036_v9 = vadd.f32 %v4111_v19, %v864_v3  ;;  %v3359_v22 = vpop.eup %3358  ;;  %v1128_v31 = vadd.f32 1.0, %v3357_v6  ;;  %3382 = vtanh.f32 %v1067_v61  ;;  %v1191_v40 = vmul.f32 %v3349_v41, %v1159_v20 }
 0x21e   : > { %v868_v27 = vpop.f32.mrf.mxu1  ;;  %v3361_v32 = vpop.eup %3360  ;;  %v1122_v17 = vadd.f32 1.0, %v3359_v22  ;;  %v1062_v35 = vmul.f32 0.5, %v1030_v13  ;;  %3384 = vtanh.f32 %v967_v63  ;;  %v968_v47 = vadd.f32 %v4117_v7, %v862_v50 }
 0x21f   : > { %v1068_v23 = vmul.f32 0.5, %v1036_v9  ;;  %v3363_v21 = vpop.eup %3362  ;;  %1256 = vadd.xlane.f32.xlu1 %v1221_v28  ;;  %v1160_v44 = vmul.f32 0.5, %v1128_v31  ;;  %v1228_v56 = vmul.f32 %v4138_v37, %v1191_v40  ;;  %v1185_v61 = vmul.f32 %v3353_v54, %v1153_v29 }
 0x220   : > { %v870_v38 = vpop.f32.mrf.mxu1  ;;  %v3365_v43 = vpop.eup %3364  ;;  %3386 = vtanh.f32 %v1062_v35  ;;  %v1154_v52 = vmul.f32 0.5, %v1122_v17  ;;  %v969_v4 = vadd.f32 %v4117_v7, %v868_v27 }
 0x221   : > { %v1037_v48 = vadd.f32 %v4111_v19, %v870_v38  ;;  %v3367_v53 = vpop.eup %3366  ;;  %3388 = vtanh.f32 %v1068_v23  ;;  %v1192_v60 = vmul.f32 %v3355_v62, %v1160_v44  ;;  %1270 = vadd.xlane.f32.xlu0 %v1228_v56  ;;  %v1222_v54 = vmul.f32 %v4138_v37, %v1185_v61 }
 0x222   : > { %v872_v49 = vpop.f32.mrf.mxu1  ;;  %v3369_v1 = vpop.eup %3368  ;;  %v1123_v63 = vadd.f32 1.0, %v3367_v53  ;;  %3390 = vtanh.f32 %v962_v33  ;;  %v1186_v13 = vmul.f32 %v3361_v32, %v1154_v52 }
 0x223   : > { %v1069_v3 = vmul.f32 0.5, %v1037_v48  ;;  %v1129_v41 = vadd.f32 1.0, %v3369_v1  ;;  %v1229_v6 = vmul.f32 %v4138_v37, %v1192_v60  ;;  %v3371_v9 = vpop.eup %3370  ;;  %v970_v32 = vadd.f32 %v4117_v7, %v872_v49 }
 0x224   : > { %v874_v50 = vpop.f32.mrf.mxu1  ;;  %v1155_v22 = vmul.f32 0.5, %v1123_v63  ;;  %v1223_v40 = vmul.f32 %v4138_v37, %v1186_v13 }
 0x225   : > { %3392 = vtanh.f32 %v1069_v3  ;;  %v1038_v20 = vadd.f32 %v4111_v19, %v874_v50  ;;  %v3373_v31 = vpop.eup %3372  ;;  %1272 = vadd.xlane.f32.xlu1 %v1229_v6  ;;  %v1161_v28 = vmul.f32 0.5, %v1129_v41  ;;  %1258 = vadd.xlane.f32.xlu0 %v1222_v54 }
 0x226   : > { %3394 = vtanh.f32 %v968_v47  ;;  %v878_v62 = vpop.f32.mrf.mxu1  ;;  %v3375_v29 = vpop.eup %3374  ;;  %v1124_v17 = vadd.f32 1.0, %v3373_v31  ;;  %v1187_v33 = vmul.f32 %v3363_v21, %v1155_v22 }
 0x227   : > { %v1070_v27 = vmul.f32 0.5, %v1038_v20  ;;  %v3377_v35 = vpop.eup %3376  ;;  %v1130_v23 = vadd.f32 1.0, %v3375_v29  ;;  %3396 = vtanh.f32 %v969_v4  ;;  %v1193_v21 = vmul.f32 %v3365_v43, %v1161_v28 }
 0x228   : > { %v880_v38 = vpop.f32.mrf.mxu1  ;;  %v3379_v44 = vpop.eup %3378  ;;  %v1224_v48 = vmul.f32 %v4138_v37, %v1187_v33  ;;  %v1156_v52 = vmul.f32 0.5, %v1124_v17  ;;  %v971_v41 = vadd.f32 %v4117_v7, %v878_v62 }
 0x229   : > { %3398 = vtanh.f32 %v1070_v27  ;;  %v1039_v47 = vadd.f32 %v4111_v19, %v880_v38  ;;  %v3381_v53 = vpop.eup %3380  ;;  %1260 = vadd.xlane.f32.xlu1 %v1223_v40  ;;  %v1162_v60 = vmul.f32 0.5, %v1130_v23  ;;  %v1230_v54 = vmul.f32 %v4138_v37, %v1193_v21 }
 0x22a   : > { %v882_v56 = vpop.f32.mrf.mxu1  ;;  %v3383_v61 = vpop.eup %3382  ;;  %v1125_v1 = vadd.f32 1.0, %v3381_v53  ;;  %v1188_v49 = vmul.f32 %v3371_v9, %v1156_v52  ;;  %3400 = vtanh.f32 %v970_v32  ;;  %1262 = vadd.xlane.f32.xlu0 %v1224_v48 }
 0x22b   : > { %v1071_v63 = vmul.f32 0.5, %v1039_v47  ;;  %v1131_v3 = vadd.f32 1.0, %v3383_v61  ;;  %v1194_v50 = vmul.f32 %v3377_v35, %v1162_v60  ;;  %v3385_v6 = vpop.eup %3384  ;;  %v972_v35 = vadd.f32 %v4117_v7, %v882_v56 }
 0x22c   : > { %v884_v4 = vpop.f32.mrf.mxu1  ;;  %v1225_v20 = vmul.f32 %v4138_v37, %v1188_v49  ;;  %v1157_v22 = vmul.f32 0.5, %v1125_v1 }
 0x22d   : > { %3402 = vtanh.f32 %v1071_v63  ;;  %v1040_v13 = vadd.f32 %v4111_v19, %v884_v4  ;;  %v3387_v43 = vpop.eup %3386  ;;  %v1163_v28 = vmul.f32 0.5, %v1131_v3  ;;  %v1231_v32 = vmul.f32 %v4138_v37, %v1194_v50 }
 0x22e   : > { %v888_v31 = vpop.f32.mrf.mxu1  ;;  %v3389_v9 = vpop.eup %3388  ;;  %v1126_v29 = vadd.f32 1.0, %v3387_v43  ;;  %1264 = vadd.xlane.f32.xlu1 %v1225_v20  ;;  %v1189_v62 = vmul.f32 %v3379_v44, %v1157_v22  ;;  %3404 = vtanh.f32 %v971_v41  ;;  %1274 = vadd.xlane.f32.xlu0 %v1230_v54 }
 0x22f   : > { %v1072_v17 = vmul.f32 0.5, %v1040_v13  ;;  %v3391_v27 = vpop.eup %3390  ;;  %v1132_v33 = vadd.f32 1.0, %v3389_v9  ;;  %v1195_v53 = vmul.f32 %v3385_v6, %v1163_v28  ;;  %v973_v56 = vadd.f32 %v4117_v7, %v888_v31 }
 0x230   : > { %v890_v23 = vpop.f32.mrf.mxu1  ;;  %v1226_v40 = vmul.f32 %v4138_v37, %v1189_v62  ;;  %v1158_v47 = vmul.f32 0.5, %v1126_v29 }
 0x231   : > { %3406 = vtanh.f32 %v1072_v17  ;;  %v1041_v38 = vadd.f32 %v4111_v19, %v890_v23  ;;  %v1164_v21 = vmul.f32 0.5, %v1132_v33  ;;  %v1232_v20 = vmul.f32 %v4138_v37, %v1195_v53 }
 0x232   : > { %v3393_v48 = vpop.eup %3392  ;;  %v892_v52 = vpop.f32.mrf.mxu1  ;;  %1276 = vadd.xlane.f32.xlu1 %v1231_v32  ;;  %v1190_v1 = vmul.f32 %v3391_v27, %v1158_v47  ;;  %3408 = vtanh.f32 %v972_v35  ;;  %1266 = vadd.xlane.f32.xlu0 %v1226_v40 }
 0x233   : > { %v3395_v44 = vpop.eup %3394  ;;  %v1133_v60 = vadd.f32 1.0, %v3393_v48  ;;  %v1073_v61 = vmul.f32 0.5, %v1041_v38  ;;  %v974_v31 = vadd.f32 %v4117_v7, %v892_v52 }
 0x234   : > { %v894_v63 = vpop.f32.mrf.mxu1  ;;  %v1196_v49 = vmul.f32 %v3395_v44, %v1164_v21  ;;  %v3397_v3 = vpop.eup %3396  ;;  %v1227_v4 = vmul.f32 %v4138_v37, %v1190_v1 }
 0x235   : > { %3410 = vtanh.f32 %v1073_v61  ;;  %v1042_v41 = vadd.f32 %v4111_v19, %v894_v63  ;;  %v1165_v50 = vmul.f32 0.5, %v1133_v60 }
 0x236   : > { %v3399_v6 = vpop.eup %3398  ;;  %v898_v13 = vpop.f32.mrf.mxu1  ;;  %1268 = vadd.xlane.f32.xlu1 %v1227_v4  ;;  %3412 = vtanh.f32 %v973_v56  ;;  %1278 = vadd.xlane.f32.xlu0 %v1232_v20  ;;  %v1233_v9 = vmul.f32 %v4138_v37, %v1196_v49 }
 0x237   : > { %v1134_v22 = vadd.f32 1.0, %v3399_v6  ;;  %v1074_v43 = vmul.f32 0.5, %v1042_v41  ;;  %v1197_v54 = vmul.f32 %v3397_v3, %v1165_v50  ;;  %v3401_v29 = vpop.eup %3400  ;;  %v975_v40 = vadd.f32 %v4117_v7, %v898_v13  ;;  %v4191_v6 = vpop.permute.xlu1 %1327 }
 0x238   : > { %v900_v28 = vpop.f32.mrf.mxu1 }
 0x239   : > { %3414 = vtanh.f32 %v1074_v43  ;;  %v1043_v17 = vadd.f32 %v4111_v19, %v900_v28  ;;  %v1234_v62 = vmul.f32 %v4138_v37, %v1197_v54  ;;  %v1166_v27 = vmul.f32 0.5, %v1134_v22 }
 0x23a   : > { %v3403_v33 = vpop.eup %3402  ;;  %v902_v35 = vpop.f32.mrf.mxu1  ;;  %1280 = vadd.xlane.f32.xlu1 %v1233_v9  ;;  %3416 = vtanh.f32 %v974_v31 }
 0x23b   : > { %v1135_v23 = vadd.f32 1.0, %v3403_v33  ;;  %v1075_v32 = vmul.f32 0.5, %v1043_v17  ;;  %v1198_v38 = vmul.f32 %v3401_v29, %v1166_v27  ;;  %1282 = vadd.xlane.f32.xlu0 %v1234_v62  ;;  %v3405_v48 = vpop.eup %3404  ;;  %v976_v63 = vadd.f32 %v4117_v7, %v902_v35  ;;  %v4196_v27 = vpop.permute.xlu0 %1323 }
 0x23c   : > { %v904_v47 = vpop.f32.mrf.mxu1 }
 0x23d   : > { %3418 = vtanh.f32 %v1075_v32  ;;  %v1044_v52 = vadd.f32 %v4111_v19, %v904_v47  ;;  %v1235_v53 = vmul.f32 %v4138_v37, %v1198_v38  ;;  %v1167_v21 = vmul.f32 0.5, %v1135_v23 }
 0x23e   : > { %v3407_v44 = vpop.eup %3406  ;;  %v908_v60 = vpop.f32.mrf.mxu1  ;;  %3420 = vtanh.f32 %v975_v40 }
 0x23f   : > { %v1136_v61 = vadd.f32 1.0, %v3407_v44  ;;  %v1076_v1 = vmul.f32 0.5, %v1044_v52  ;;  %1284 = vadd.xlane.f32.xlu1 %v1235_v53  ;;  %v1199_v56 = vmul.f32 %v3405_v48, %v1167_v21  ;;  %v3409_v3 = vpop.eup %3408  ;;  %v977_v31 = vadd.f32 %v4117_v7, %v908_v60  ;;  %v4198_v40 = vpop.permute.xlu1 %1334 }
 0x240   : > { %v910_v49 = vpop.f32.mrf.mxu1 }
 0x241   : > { %3422 = vtanh.f32 %v1076_v1  ;;  %v1045_v41 = vadd.f32 %v4111_v19, %v910_v49  ;;  %v1236_v4 = vmul.f32 %v4138_v37, %v1199_v56  ;;  %v1168_v50 = vmul.f32 0.5, %v1136_v61  ;;  %v4203_v49 = vpop.permute.xlu0 %1345 }
 0x242   : > { %v3411_v13 = vpop.eup %3410  ;;  %v912_v20 = vpop.f32.mrf.mxu1  ;;  %3424 = vtanh.f32 %v976_v63 }
 0x243   : > { %v1137_v22 = vadd.f32 1.0, %v3411_v13  ;;  %v1077_v43 = vmul.f32 0.5, %v1045_v41  ;;  %1286 = vadd.xlane.f32.xlu0 %v1236_v4  ;;  %v1200_v54 = vmul.f32 %v3409_v3, %v1168_v50  ;;  %v3413_v9 = vpop.eup %3412  ;;  %v978_v47 = vadd.f32 %v4117_v7, %v912_v20  ;;  %v4208_v20 = vpop.permute.xlu1 %1338 }
 0x244   : > { %v914_v28 = vpop.f32.mrf.mxu1 }
 0x245   : > { %3426 = vtanh.f32 %v1077_v43  ;;  %v1046_v29 = vadd.f32 %v4111_v19, %v914_v28  ;;  %v1237_v17 = vmul.f32 %v4138_v37, %v1200_v54  ;;  %v1169_v62 = vmul.f32 0.5, %v1137_v22 }
 0x246   : > { %v3415_v33 = vpop.eup %3414  ;;  %v918_v35 = vpop.f32.mrf.mxu1  ;;  %3428 = vtanh.f32 %v977_v31 }
 0x247   : > { %v1138_v23 = vadd.f32 1.0, %v3415_v33  ;;  %v1078_v32 = vmul.f32 0.5, %v1046_v29  ;;  %1288 = vadd.xlane.f32.xlu1 %v1237_v17  ;;  %v1201_v38 = vmul.f32 %v3413_v9, %v1169_v62  ;;  %v3417_v52 = vpop.eup %3416  ;;  %v979_v3 = vadd.f32 %v4117_v7, %v918_v35 }
 0x248   : > { %v920_v48 = vpop.f32.mrf.mxu1 }
 0x249   : > { %3430 = vtanh.f32 %v1078_v32  ;;  %v1047_v53 = vadd.f32 %v4111_v19, %v920_v48  ;;  %v1238_v21 = vmul.f32 %v4138_v37, %v1201_v38  ;;  %v1170_v44 = vmul.f32 0.5, %v1138_v23  ;;  %v4213_v32 = vpop.permute.xlu0 %1411 }
 0x24a   : > { %v3419_v60 = vpop.eup %3418  ;;  %v922_v61 = vpop.f32.mrf.mxu1  ;;  %3432 = vtanh.f32 %v978_v47 }
 0x24b   : > { %v1139_v1 = vadd.f32 1.0, %v3419_v60  ;;  %v1079_v56 = vmul.f32 0.5, %v1047_v53  ;;  %1290 = vadd.xlane.f32.xlu0 %v1238_v21  ;;  %v1202_v63 = vmul.f32 %v3417_v52, %v1170_v44  ;;  %v3421_v4 = vpop.eup %3420  ;;  %v980_v29 = vadd.f32 %v4117_v7, %v922_v61  ;;  %v4215_v53 = vpop.permute.xlu1 %1349 }
 0x24c   : > { %v924_v41 = vpop.f32.mrf.mxu1 }
 0x24d   : > { %3434 = vtanh.f32 %v1079_v56  ;;  %v1048_v50 = vadd.f32 %v4111_v19, %v924_v41  ;;  %v1239_v13 = vmul.f32 %v4138_v37, %v1202_v63  ;;  %v1171_v22 = vmul.f32 0.5, %v1139_v1 }
 0x24e   : > { %v3423_v43 = vpop.eup %3422  ;;  %v928_v54 = vpop.f32.mrf.mxu1  ;;  %3436 = vtanh.f32 %v979_v3 }
 0x24f   : > { %v1140_v31 = vadd.f32 1.0, %v3423_v43  ;;  %v1080_v28 = vmul.f32 0.5, %v1048_v50  ;;  %1292 = vadd.xlane.f32.xlu1 %v1239_v13  ;;  %v1203_v9 = vmul.f32 %v3421_v4, %v1171_v22  ;;  %v3425_v62 = vpop.eup %3424  ;;  %v981_v44 = vadd.f32 %v4117_v7, %v928_v54  ;;  %v4220_v22 = vpop.permute.xlu0 %1422 }
 0x250   : > { %v930_v17 = vpop.f32.mrf.mxu1 }
 0x251   : > { %3438 = vtanh.f32 %v1080_v28  ;;  %v1049_v33 = vadd.f32 %v4111_v19, %v930_v17  ;;  %v1240_v35 = vmul.f32 %v4138_v37, %v1203_v9  ;;  %v1172_v23 = vmul.f32 0.5, %v1140_v31  ;;  %v4224_v9 = vpop.permute.xlu1 %1415 }
 0x252   : > { %v3427_v38 = vpop.eup %3426  ;;  %v932_v47 = vpop.f32.mrf.mxu1  ;;  %3440 = vtanh.f32 %v980_v29 }
 0x253   : > { %v1141_v48 = vadd.f32 1.0, %v3427_v38  ;;  %v1081_v52 = vmul.f32 0.5, %v1049_v33  ;;  %1294 = vadd.xlane.f32.xlu0 %v1240_v35  ;;  %v1204_v21 = vmul.f32 %v3425_v62, %v1172_v23  ;;  %v3429_v61 = vpop.eup %3428  ;;  %v982_v43 = vadd.f32 %v4117_v7, %v932_v47 }
 0x254   : > { %v934_v60 = vpop.f32.mrf.mxu1 }
 0x255   : > { %3442 = vtanh.f32 %v1081_v52  ;;  %v1050_v1 = vadd.f32 %v4111_v19, %v934_v60  ;;  %v1241_v56 = vmul.f32 %v4138_v37, %v1204_v21  ;;  %v1173_v63 = vmul.f32 0.5, %v1141_v48  ;;  %v4230_v60 = vpop.permute.xlu0 %1356 }
 0x256   : > { %v3431_v3 = vpop.eup %3430  ;;  %v938_v41 = vpop.f32.mrf.mxu1  ;;  %3444 = vtanh.f32 %v981_v44 }
 0x257   : > { %v1142_v4 = vadd.f32 1.0, %v3431_v3  ;;  %v1082_v50 = vmul.f32 0.5, %v1050_v1  ;;  %1296 = vadd.xlane.f32.xlu1 %v1241_v56  ;;  %v1205_v13 = vmul.f32 %v3429_v61, %v1173_v63  ;;  %v3433_v31 = vpop.eup %3432  ;;  %v983_v48 = vadd.f32 %v4117_v7, %v938_v41  ;;  %v4232_v3 = vpop.permute.xlu1 %1426 }
 0x258   : > { %v940_v54 = vpop.f32.mrf.mxu1 }
 0x259   : > { %3446 = vtanh.f32 %v1082_v50  ;;  %v1051_v28 = vadd.f32 %v4111_v19, %v940_v54  ;;  %v1242_v29 = vmul.f32 %v4138_v37, %v1205_v13  ;;  %v1174_v17 = vmul.f32 0.5, %v1142_v4 }
 0x25a   : > { %v3435_v62 = vpop.eup %3434  ;;  %v942_v33 = vpop.f32.mrf.mxu1  ;;  %3448 = vtanh.f32 %v982_v43 }
 0x25b   : > { %v1143_v35 = vadd.f32 1.0, %v3435_v62  ;;  %v1083_v23 = vmul.f32 0.5, %v1051_v28  ;;  %1298 = vadd.xlane.f32.xlu0 %v1242_v29  ;;  %v1206_v38 = vmul.f32 %v3433_v31, %v1174_v17  ;;  %v3437_v52 = vpop.eup %3436  ;;  %v984_v41 = vadd.f32 %v4117_v7, %v942_v33  ;;  %v4236_v31 = vpop.permute.xlu0 %1433 }
 0x25c   : > { %v944_v47 = vpop.f32.mrf.mxu1  ;;  %v4238_v17 = vpop.permute.xlu1 %1360 }
 0x25d   : > { %3450 = vtanh.f32 %v1083_v23  ;;  %v1052_v21 = vadd.f32 %v4111_v19, %v944_v47  ;;  %v1243_v44 = vmul.f32 %v4138_v37, %v1206_v38  ;;  %v1175_v61 = vmul.f32 0.5, %v1143_v35 }
 0x25e   : > { %v3439_v1 = vpop.eup %3438  ;;  %3452 = vtanh.f32 %v983_v48 }
 0x25f   : > { %v1144_v56 = vadd.f32 1.0, %v3439_v1  ;;  %v1084_v63 = vmul.f32 0.5, %v1052_v21  ;;  %1300 = vadd.xlane.f32.xlu1 %v1243_v44  ;;  %v1207_v4 = vmul.f32 %v3437_v52, %v1175_v61  ;;  %v3441_v50 = vpop.eup %3440  ;;  %v4241_v48 = vpop.permute.xlu0 %1367 }
 0x260   : > { %v4244_v61 = vpop.permute.xlu1 %1437 }
 0x261   : > { %3454 = vtanh.f32 %v1084_v63  ;;  %v1244_v13 = vmul.f32 %v4138_v37, %v1207_v4  ;;  %v1176_v19 = vmul.f32 0.5, %v1144_v56 }
 0x262   : > { %v3443_v43 = vpop.eup %3442  ;;  %3456 = vtanh.f32 %v984_v41 }
 0x263   : > { %v1145_v54 = vadd.f32 1.0, %v3443_v43  ;;  %1302 = vadd.xlane.f32.xlu0 %v1244_v13  ;;  %v1208_v28 = vmul.f32 %v3441_v50, %v1176_v19  ;;  %v3445_v29 = vpop.eup %3444  ;;  %v4247_v13 = vpop.permute.xlu0 %1444 }
 0x264   : > { %v4249_v43 = vpop.permute.xlu1 %1371 }
 0x265   : > { %v1245_v62 = vmul.f32 %v4138_v37, %v1208_v28  ;;  %v1177_v35 = vmul.f32 0.5, %v1145_v54 }
 0x266   : > { %v3447_v23 = vpop.eup %3446 }
 0x267   : > { %v1146_v38 = vadd.f32 1.0, %v3447_v23  ;;  %1304 = vadd.xlane.f32.xlu1 %v1245_v62  ;;  %v1209_v7 = vmul.f32 %v3445_v29, %v1177_v35  ;;  %v3449_v33 = vpop.eup %3448  ;;  %v1379_v35 = vpop.permute.xlu0 %1378 }
 0x269   : > { %v1246_v47 = vmul.f32 %v4138_v37, %v1209_v7  ;;  %v1178_v52 = vmul.f32 0.5, %v1146_v38  ;;  %v4253_v38 = vpop.permute.xlu1 %1448 }
 0x26a   : > { %v3451_v21 = vpop.eup %3450 }
 0x26b   : > { %v1147_v44 = vadd.f32 1.0, %v3451_v21  ;;  %1306 = vadd.xlane.f32.xlu0 %v1246_v47  ;;  %v1210_v1 = vmul.f32 %v3449_v33, %v1178_v52  ;;  %v3453_v56 = vpop.eup %3452  ;;  %v4255_v7 = vpop.permute.xlu0 %1455 }
 0x26d   : > { %v1247_v63 = vmul.f32 %v4138_v37, %v1210_v1  ;;  %v1179_v4 = vmul.f32 0.5, %v1147_v44  ;;  %v1383_v33 = vpop.permute.xlu1 %1382 }
 0x26e   : > { %v3455_v50 = vpop.eup %3454 }
 0x26f   : > { %v1148_v41 = vadd.f32 1.0, %v3455_v50  ;;  %1308 = vadd.xlane.f32.xlu1 %v1247_v63  ;;  %v1211_v19 = vmul.f32 %v3453_v56, %v1179_v4  ;;  %v3457_v29 = vpop.eup %3456  ;;  %v1390_v47 = vpop.permute.xlu0 %1389 }
 0x271   : > { %v1248_v54 = vmul.f32 %v4138_v37, %v1211_v19  ;;  %v1180_v28 = vmul.f32 0.5, %v1148_v41  ;;  %v4257_v52 = vpop.permute.xlu1 %1459 }
 0x273   : > { %1310 = vadd.xlane.f32.xlu0 %v1248_v54  ;;  %v1212_v62 = vmul.f32 %v3457_v29, %v1180_v28  ;;  %v4259_v21 = vpop.permute.xlu0 %1466 }
 0x275   : > { %v1249_v23 = vmul.f32 %v4138_v37, %v1212_v62  ;;  %v1394_v44 = vpop.permute.xlu1 %1393 }
 0x277   : > { %1312 = vadd.xlane.f32.xlu1 %v1249_v23  ;;  %v1401_v1 = vpop.permute.xlu0 %1400 }
 0x279   : > { %v4261_v56 = vpop.permute.xlu1 %1470 }
 0x27b   : > { %v4263_v63 = vpop.permute.xlu0 %1477 }
 0x27d   : > { %v1405_v4 = vpop.permute.xlu1 %1404 }
 0x27f   : > { %v4265_v50 = vpop.permute.xlu0 %1488 }
 0x281   : > { %v4267_v37 = vpop.permute.xlu1 %1481 }
 0x285   : > { %v4273_v54 = vpop.permute.xlu1 %1492 }
 0x29c   : > { %v1251_v41 = vpop.xlane.xlu0 %1250 }
 0x29d   : > { %v4270_v19 = vadd.f32 %v4196_v27, %v1251_v41 }
 0x29f   : > { %1591 = vperm.xlu0 %3301, %v4270_v19  }
 0x2a0   : > { %v1253_v28 = vpop.xlane.xlu0 %1252 }
 0x2a1   : > { %v4276_v29 = vadd.f32 %v4191_v6, %v1253_v28 }
 0x2a3   : > { %1594 = vperm.xlu1 %3302, %v4276_v29  }
 0x2a4   : > { %v1255_v62 = vpop.xlane.xlu1 %1254 }
 0x2a5   : > { %v4280_v23 = vadd.f32 %v4198_v40, %v1255_v62 }
 0x2a7   : > { %1597 = vperm.xlu1 %3302, %v4280_v23  }
 0x2a8   : > { %v1257_v18 = vpop.xlane.xlu1 %1256 }
 0x2a9   : > { %v4284_v27 = vadd.f32 %v4208_v20, %v1257_v18 }
 0x2aa   : > { %v1271_v41 = vpop.xlane.xlu0 %1270 }
 0x2ab   : > { %1600 = vperm.xlu0 %3301, %v4284_v27   ;;  %v4287_v5 = vadd.f32 %v1379_v35, %v1271_v41 }
 0x2ad   : > { %1621 = vperm.xlu1 %3302, %v4287_v5  }
 0x2ae   : > { %v1273_v0 = vpop.xlane.xlu1 %1272  ;;  %v1259_v28 = vpop.xlane.xlu0 %1258 }
 0x2af   : > { %v4290_v6 = vadd.f32 %v1383_v33, %v1273_v0  ;;  %v4293_v40 = vadd.f32 %v4203_v49, %v1259_v28 }
 0x2b1   : > { %1624 = vperm.xlu0 %3301, %v4290_v6   ;;  %1603 = vperm.xlu1 %3302, %v4293_v40  }
 0x2b2   : > { %v1261_v62 = vpop.xlane.xlu1 %1260 }
 0x2b3   : > { %v4298_v18 = vadd.f32 %v4215_v53, %v1261_v62  ;;  %v1263_v20 = vpop.xlane.xlu0 %1262 }
 0x2b4   : > { %v4301_v35 = vadd.f32 %v4230_v60, %v1263_v20 }
 0x2b5   : > { %1606 = vperm.xlu0 %3301, %v4298_v18  }
 0x2b6   : > { %1609 = vperm.xlu1 %3302, %v4301_v35  }
 0x2b7   : > { %v1265_v0 = vpop.xlane.xlu1 %1264  ;;  %v1275_v33 = vpop.xlane.xlu0 %1274 }
 0x2b8   : > { %v4306_v49 = vadd.f32 %v4238_v17, %v1265_v0  ;;  %v4308_v41 = vadd.f32 %v1390_v47, %v1275_v33 }
 0x2ba   : > { %1612 = vperm.xlu0 %3301, %v4306_v49   ;;  %1627 = vperm.xlu1 %3302, %v4308_v41  }
 0x2bb   : > { %v1277_v53 = vpop.xlane.xlu1 %1276  ;;  %v1267_v60 = vpop.xlane.xlu0 %1266 }
 0x2bc   : > { %v4312_v28 = vadd.f32 %v1394_v44, %v1277_v53  ;;  %v4315_v62 = vadd.f32 %v4241_v48, %v1267_v60 }
 0x2be   : > { %1630 = vperm.xlu0 %3301, %v4312_v28   ;;  %1615 = vperm.xlu1 %3302, %v4315_v62  }
 0x2bf   : > { %v1269_v20 = vpop.xlane.xlu1 %1268  ;;  %v1279_v17 = vpop.xlane.xlu0 %1278 }
 0x2c0   : > { %v4320_v47 = vadd.f32 %v4249_v43, %v1269_v20  ;;  %v4322_v0 = vadd.f32 %v1401_v1, %v1279_v17 }
 0x2c2   : > { %1618 = vperm.xlu0 %3301, %v4320_v47   ;;  %1633 = vperm.xlu1 %3302, %v4322_v0  }
 0x2c3   : > { %v1281_v44 = vpop.xlane.xlu1 %1280 }
 0x2c4   : > { %v1283_v33 = vpop.xlane.xlu0 %1282  ;;  %v4326_v53 = vadd.f32 %v1405_v4, %v1281_v44 }
 0x2c5   : > { %v4329_v48 = vadd.f32 %v4213_v32, %v1283_v33 }
 0x2c6   : > { %1636 = vperm.xlu0 %3301, %v4326_v53  }
 0x2c7   : > { %1639 = vperm.xlu1 %3302, %v4329_v48  }
 0x2c8   : > { %v1285_v60 = vpop.xlane.xlu1 %1284 }
 0x2c9   : > { %v4334_v43 = vadd.f32 %v4224_v9, %v1285_v60 }
 0x2cb   : > { %1642 = vperm.xlu0 %3301, %v4334_v43  }
 0x2cc   : > { %v1287_v1 = vpop.xlane.xlu0 %1286 }
 0x2cd   : > { %v4338_v20 = vadd.f32 %v4220_v22, %v1287_v1 }
 0x2cf   : > { %1645 = vperm.xlu1 %3302, %v4338_v20  }
 0x2d0   : > { %v1289_v4 = vpop.xlane.xlu1 %1288 }
 0x2d1   : > { %v4342_v32 = vadd.f32 %v4232_v3, %v1289_v4 }
 0x2d3   : > { %1648 = vperm.xlu0 %3301, %v4342_v32  }
 0x2d4   : > { %v1291_v17 = vpop.xlane.xlu0 %1290 }
 0x2d5   : > { %v4346_v44 = vadd.f32 %v4236_v31, %v1291_v17 }
 0x2d7   : > { %1651 = vperm.xlu1 %3302, %v4346_v44  }
 0x2d8   : > { %v1293_v9 = vpop.xlane.xlu1 %1292 }
 0x2d9   : > { %v4350_v33 = vadd.f32 %v4244_v61, %v1293_v9 }
 0x2db   : > { %1654 = vperm.xlu0 %3301, %v4350_v33  }
 0x2dc   : > { %v1295_v22 = vpop.xlane.xlu0 %1294 }
 0x2dd   : > { %v4354_v60 = vadd.f32 %v4247_v13, %v1295_v22 }
 0x2df   : > { %1657 = vperm.xlu1 %3302, %v4354_v60  }
 0x2e0   : > { %v1297_v3 = vpop.xlane.xlu1 %1296 }
 0x2e1   : > { %v4358_v1 = vadd.f32 %v4253_v38, %v1297_v3 }
 0x2e3   : > { %1660 = vperm.xlu0 %3301, %v4358_v1  }
 0x2e4   : > { %v1299_v31 = vpop.xlane.xlu0 %1298 }
 0x2e5   : > { %v4362_v4 = vadd.f32 %v4255_v7, %v1299_v31 }
 0x2e7   : > { %1663 = vperm.xlu1 %3302, %v4362_v4  }
 0x2e8   : > { %v1301_v61 = vpop.xlane.xlu1 %1300 }
 0x2e9   : > { %v4366_v17 = vadd.f32 %v4257_v52, %v1301_v61 }
 0x2eb   : > { %1666 = vperm.xlu0 %3301, %v4366_v17  }
 0x2ec   : > { %v1303_v13 = vpop.xlane.xlu0 %1302 }
 0x2ed   : > { %v4370_v9 = vadd.f32 %v4259_v21, %v1303_v13 }
 0x2ef   : > { %1669 = vperm.xlu1 %3302, %v4370_v9  }
 0x2f0   : > { %v1305_v38 = vpop.xlane.xlu1 %1304 }
 0x2f1   : > { %v4374_v22 = vadd.f32 %v4261_v56, %v1305_v38 }
 0x2f3   : > { %1672 = vperm.xlu0 %3301, %v4374_v22  }
 0x2f4   : > { %v1307_v7 = vpop.xlane.xlu0 %1306 }
 0x2f5   : > { %v4378_v3 = vadd.f32 %v4263_v63, %v1307_v7 }
 0x2f7   : > { %1675 = vperm.xlu1 %3302, %v4378_v3  }
 0x2f8   : > { %v1309_v52 = vpop.xlane.xlu1 %1308 }
 0x2f9   : > { %v4382_v31 = vadd.f32 %v4267_v37, %v1309_v52 }
 0x2fb   : > { %1678 = vperm.xlu0 %3301, %v4382_v31  }
 0x2fc   : > { %v1311_v21 = vpop.xlane.xlu0 %1310 }
 0x2fd   : > { %v4386_v61 = vadd.f32 %v4265_v50, %v1311_v21 }
 0x2ff   : > { %4891 = vst [vmem:[#allocation28_spill] sm:$0xff] %v4386_v61  ;;  %1681 = vperm.xlu1 %3302, %v4386_v61  }
 0x300   : > { %v1313_v56 = vpop.xlane.xlu1 %1312 }
 0x301   : > { %v4390_v13 = vadd.f32 %v4273_v54, %v1313_v56 }
 0x303   : > { %4892 = vst [vmem:[#allocation29_spill] sm:$0xff] %v4390_v13  ;;  %1684 = vperm.xlu0 %3301, %v4390_v13  }
 0x31a   : > { %v1592_v38 = vpop.permute.xlu0 %1591 }
 0x31b   : > { %v1691_v59 = vrot.slane %v1592_v38, %v3944_v12 }
 0x31e   : > { %v1595_v63 = vpop.permute.xlu1 %1594 }
 0x31f   : > { %v1696_v54 = vrot.slane %v1595_v63, %v3950_v14 }
 0x321   : > { %v1698_v63 = vsel %vm1697_vm3, %v1696_v54, %v1691_v59 }
 0x322   : > { %v1598_v7 = vpop.permute.xlu1 %1597 }
 0x323   : > { %v1702_v56 = vrot.slane %v1598_v7, %v3944_v12 }
 0x326   : > { %v1601_v58 = vpop.permute.xlu0 %1600 }
 0x327   : > { %v1706_v21 = vrot.slane %v1601_v58, %v3950_v14 }
 0x328   : > { %v1622_v37 = vpop.permute.xlu1 %1621 }
 0x329   : > { %v1707_v46 = vsel %vm1697_vm3, %v1706_v21, %v1702_v56  ;;  %v1738_v56 = vrot.slane %v1622_v37, %v3944_v12 }
 0x32a   : > { %v1835_v36 = vsel %vm1834_vm4, %v1707_v46, %v1698_v63 }
 0x32c   : > { %v1625_v52 = vpop.permute.xlu0 %1624  ;;  %v1604_v51 = vpop.permute.xlu1 %1603 }
 0x32d   : > { %v1711_v25 = vrot.slane %v1604_v51, %v3944_v12 }
 0x330   : > { %v1607_v45 = vpop.permute.xlu0 %1606 }
 0x331   : > { %v1610_v39 = vpop.permute.xlu1 %1609  ;;  %v1715_v26 = vrot.slane %v1607_v45, %v3950_v14 }
 0x332   : > { %v1720_v58 = vrot.slane %v1610_v39, %v3944_v12 }
 0x333   : > { %v1716_v45 = vsel %vm1697_vm3, %v1715_v26, %v1711_v25 }
 0x334   : > { %v1837_v25 = vsel %vm1836_vm5, %v1716_v45, %v1835_v36 }
 0x335   : > { %v1613_v34 = vpop.permute.xlu0 %1612  ;;  %v1628_v50 = vpop.permute.xlu1 %1627 }
 0x336   : > { %v1724_v10 = vrot.slane %v1613_v34, %v3950_v14  ;;  %v1742_v34 = vrot.slane %v1625_v52, %v3950_v14 }
 0x338   : > { %v1725_v7 = vsel %vm1697_vm3, %v1724_v10, %v1720_v58  ;;  %v1747_v10 = vrot.slane %v1628_v50, %v3944_v12  ;;  %v1743_v46 = vsel %vm1697_vm3, %v1742_v34, %v1738_v56 }
 0x339   : > { %v1631_v57 = vpop.permute.xlu0 %1630  ;;  %v1616_v8 = vpop.permute.xlu1 %1615  ;;  %v1839_v59 = vsel %vm1838_vm6, %v1725_v7, %v1837_v25 }
 0x33a   : > { %v1751_v38 = vrot.slane %v1631_v57, %v3950_v14  ;;  %v1729_v21 = vrot.slane %v1616_v8, %v3944_v12 }
 0x33c   : > { %v1752_v54 = vsel %vm1697_vm3, %v1751_v38, %v1747_v10 }
 0x33d   : > { %v1619_v51 = vpop.permute.xlu0 %1618  ;;  %v1634_v26 = vpop.permute.xlu1 %1633 }
 0x33e   : > { %v1733_v39 = vrot.slane %v1619_v51, %v3950_v14  ;;  %v1756_v37 = vrot.slane %v1634_v26, %v3944_v12 }
 0x340   : > { %v1734_v52 = vsel %vm1697_vm3, %v1733_v39, %v1729_v21 }
 0x341   : > { %v1841_v57 = vsel %vm1840_vm7, %v1734_v52, %v1839_v59  ;;  %v1637_v8 = vpop.permute.xlu0 %1636 }
 0x342   : > { %v1760_v36 = vrot.slane %v1637_v8, %v3950_v14  ;;  %v1843_v58 = vsel %vm1842_vm8, %v1743_v46, %v1841_v57  ;;  %v1640_v51 = vpop.permute.xlu1 %1639 }
 0x343   : > { %v1845_v45 = vsel %vm1844_vm9, %v1752_v54, %v1843_v58 }
 0x344   : > { %v1761_v50 = vsel %vm1697_vm3, %v1760_v36, %v1756_v37 }
 0x345   : > { %v1847_v63 = vsel %vm1846_vm10, %v1761_v50, %v1845_v45 }
 0x346   : > { %v1858_v34 = vsel %vm1857_vm11, %v1847_v63, -inf  ;;  %v1643_v7 = vpop.permute.xlu0 %1642 }
 0x347   : > { %1859 = vmax.xlane.f32.xlu1 %v1858_v34  ;;  %v1769_v54 = vrot.slane %v1643_v7, %v3950_v14  ;;  %v1765_v34 = vrot.slane %v1640_v51, %v3944_v12 }
 0x349   : > { %v1770_v61 = vsel %vm1697_vm3, %v1769_v54, %v1765_v34 }
 0x34a   : > { %v1646_v38 = vpop.permute.xlu1 %1645 }
 0x34b   : > { %v1774_v37 = vrot.slane %v1646_v38, %v3944_v12 }
 0x34e   : > { %v1649_v21 = vpop.permute.xlu0 %1648 }
 0x34f   : > { %v1778_v57 = vrot.slane %v1649_v21, %v3950_v14 }
 0x351   : > { %v1779_v13 = vsel %vm1697_vm3, %v1778_v57, %v1774_v37 }
 0x352   : > { %v1652_v56 = vpop.permute.xlu1 %1651  ;;  %v1848_v51 = vsel %vm1834_vm4, %v1779_v13, %v1770_v61 }
 0x353   : > { %v1783_v45 = vrot.slane %v1652_v56, %v3944_v12 }
 0x356   : > { %v1655_v39 = vpop.permute.xlu0 %1654 }
 0x357   : > { %v1787_v8 = vrot.slane %v1655_v39, %v3950_v14 }
 0x359   : > { %v1788_v7 = vsel %vm1697_vm3, %v1787_v8, %v1783_v45 }
 0x35a   : > { %v1658_v26 = vpop.permute.xlu1 %1657 }
 0x35b   : > { %v1792_v21 = vrot.slane %v1658_v26, %v3944_v12 }
 0x35e   : > { %v1661_v25 = vpop.permute.xlu0 %1660 }
 0x35f   : > { %v1796_v36 = vrot.slane %v1661_v25, %v3950_v14 }
 0x361   : > { %v1797_v56 = vsel %vm1697_vm3, %v1796_v36, %v1792_v21 }
 0x362   : > { %v1664_v10 = vpop.permute.xlu1 %1663 }
 0x363   : > { %v1801_v38 = vrot.slane %v1664_v10, %v3944_v12 }
 0x366   : > { %v1667_v59 = vpop.permute.xlu0 %1666 }
 0x367   : > { %v1805_v50 = vrot.slane %v1667_v59, %v3950_v14 }
 0x369   : > { %v1806_v57 = vsel %vm1697_vm3, %v1805_v50, %v1801_v38 }
 0x36a   : > { %v1670_v46 = vpop.permute.xlu1 %1669 }
 0x36b   : > { %v1810_v59 = vrot.slane %v1670_v46, %v3944_v12 }
 0x36e   : > { %v1673_v52 = vpop.permute.xlu0 %1672 }
 0x36f   : > { %v1814_v39 = vrot.slane %v1673_v52, %v3950_v14  ;;  %v1849_v52 = vsel %vm1836_vm5, %v1788_v7, %v1848_v51 }
 0x370   : > { %v1850_v10 = vsel %vm1838_vm6, %v1797_v56, %v1849_v52 }
 0x371   : > { %v1815_v8 = vsel %vm1697_vm3, %v1814_v39, %v1810_v59  ;;  %v1851_v36 = vsel %vm1840_vm7, %v1806_v57, %v1850_v10 }
 0x372   : > { %v1676_v63 = vpop.permute.xlu1 %1675  ;;  %v1852_v13 = vsel %vm1842_vm8, %v1815_v8, %v1851_v36 }
 0x373   : > { %v1819_v26 = vrot.slane %v1676_v63, %v3944_v12 }
 0x376   : > { %v1679_v58 = vpop.permute.xlu0 %1678 }
 0x377   : > { %v1823_v25 = vrot.slane %v1679_v58, %v3950_v14 }
 0x379   : > { %v1824_v58 = vsel %vm1697_vm3, %v1823_v25, %v1819_v26 }
 0x37a   : > { %v1682_v37 = vpop.permute.xlu1 %1681  ;;  %v1853_v50 = vsel %vm1844_vm9, %v1824_v58, %v1852_v13 }
 0x37b   : > { %v1828_v46 = vrot.slane %v1682_v37, %v3944_v12 }
 0x37e   : > { %v1685_v54 = vpop.permute.xlu0 %1684 }
 0x37f   : > { %v1832_v61 = vrot.slane %v1685_v54, %v3950_v14 }
 0x381   : > { %v1833_v45 = vsel %vm1697_vm3, %v1832_v61, %v1828_v46 }
 0x382   : > { %v1854_v63 = vsel %vm1846_vm10, %v1833_v45, %v1853_v50 }
 0x383   : > { %v1861_v34 = vsel %vm1857_vm11, %v1854_v63, -inf }
 0x384   : > { %1862 = vmax.xlane.f32.xlu0 %v1861_v34 }
 0x3d0   : > { %v1860_v21 = vpop.xlane.xlu1 %1859 }
 0x3d1   : > { %v1869_v39 = vrot.slane %v1860_v21, %v3941_v11  ;;  %v1873_v7 = vrot.slane %v1860_v21, %v3953_v15  ;;  %v1877_v56 = vrot.slane %v1860_v21, %v3956_v16  ;;  %v1881_v37 = vrot.slane %v1860_v21, %v3973_v24 }
 0x3d2   : > { %v1889_v36 = vrot.slane %v1860_v21, %v3999_v42  ;;  %v1893_v13 = vrot.slane %v1860_v21, %v4014_v55 }
 0x3d3   : > { %v1946_v38 = vsub.f32 %v4270_v19, %v1869_v39  ;;  %v1947_v25 = vsub.f32 %v4276_v29, %v1869_v39  ;;  %v1949_v59 = vsub.f32 %v4284_v27, %v1873_v7  ;;  %v1948_v51 = vsub.f32 %v4280_v23, %v1873_v7 }
 0x3d4   : > { %v1951_v52 = vsub.f32 %v4298_v18, %v1877_v56  ;;  %v1950_v10 = vsub.f32 %v4293_v40, %v1877_v56  ;;  %v1885_v29 = vrot.slane %v1860_v21, %v3980_v30  ;;  %v1953_v58 = vsub.f32 %v4306_v49, %v1881_v37 }
 0x3d5   : > { %v1978_v57 = vmul.f32 1.442695, %v1946_v38  ;;  %v1980_v26 = vmul.f32 1.442695, %v1947_v25  ;;  %v1984_v8 = vmul.f32 1.442695, %v1949_v59  ;;  %v1952_v23 = vsub.f32 %v4301_v35, %v1881_v37 }
 0x3d6   : > { %v1982_v19 = vmul.f32 1.442695, %v1948_v51  ;;  %v1988_v27 = vmul.f32 1.442695, %v1951_v52  ;;  %v1986_v54 = vmul.f32 1.442695, %v1950_v10  ;;  %v1955_v18 = vsub.f32 %v4320_v47, %v1885_v29 }
 0x3d7   : > { %3458 = vpow2.f32 %v1978_v57  ;;  %v1992_v46 = vmul.f32 1.442695, %v1953_v58  ;;  %v1954_v40 = vsub.f32 %v4315_v62, %v1885_v29  ;;  %v1990_v61 = vmul.f32 1.442695, %v1952_v23 }
 0x3d8   : > { %3460 = vpow2.f32 %v1980_v26  ;;  %v1957_v49 = vsub.f32 %v4290_v6, %v1889_v36  ;;  %v1996_v45 = vmul.f32 1.442695, %v1955_v18  ;;  %v1956_v35 = vsub.f32 %v4287_v5, %v1889_v36 }
 0x3d9   : > { %3462 = vpow2.f32 %v1984_v8  ;;  %v1994_v63 = vmul.f32 1.442695, %v1954_v40  ;;  %v1897_v62 = vrot.slane %v1860_v21, %v4031_v2  ;;  %v1959_v47 = vsub.f32 %v4312_v28, %v1893_v13 }
 0x3da   : > { %3464 = vpow2.f32 %v1982_v19  ;;  %v2000_v6 = vmul.f32 1.442695, %v1957_v49  ;;  %v1958_v7 = vsub.f32 %v4308_v41, %v1893_v13  ;;  %v1998_v5 = vmul.f32 1.442695, %v1956_v35 }
 0x3db   : > { %3466 = vpow2.f32 %v1988_v27  ;;  %v1961_v25 = vsub.f32 %v4326_v53, %v1897_v62  ;;  %v2004_v21 = vmul.f32 1.442695, %v1959_v47  ;;  %v1960_v28 = vsub.f32 %v4322_v0, %v1897_v62 }
 0x3dc   : > { %3468 = vpow2.f32 %v1986_v54  ;;  %v2002_v59 = vmul.f32 1.442695, %v1958_v7 }
 0x3dd   : > { %3470 = vpow2.f32 %v1992_v46  ;;  %v2008_v41 = vmul.f32 1.442695, %v1961_v25  ;;  %v2006_v53 = vmul.f32 1.442695, %v1960_v28 }
 0x3de   : > { %3472 = vpow2.f32 %v1990_v61 }
 0x3df   : > { %3474 = vpow2.f32 %v1996_v45 }
 0x3e0   : > { %3476 = vpow2.f32 %v1994_v63 }
 0x3e1   : > { %3478 = vpow2.f32 %v2000_v6 }
 0x3e2   : > { %3480 = vpow2.f32 %v1998_v5 }
 0x3e3   : > { %3482 = vpow2.f32 %v2004_v21 }
 0x3e4   : > { %v4475_v50 = vpop.eup %3458  ;;  %3484 = vpow2.f32 %v2002_v59 }
 0x3e5   : > { %v4478_v34 = vpop.eup %3460  ;;  %2075 = vperm.xlu0 %3301, %v4475_v50   ;;  %3486 = vpow2.f32 %v2008_v41 }
 0x3e6   : > { %2078 = vperm.xlu1 %3302, %v4478_v34   ;;  %v4484_v39 = vpop.eup %3462  ;;  %3488 = vpow2.f32 %v2006_v53 }
 0x3e7   : > { %v4487_v38 = vpop.eup %3464 }
 0x3e8   : > { %v4492_v56 = vpop.eup %3466 }
 0x3e9   : > { %2084 = vperm.xlu0 %3301, %v4484_v39   ;;  %v4495_v51 = vpop.eup %3468 }
 0x3ea   : > { %2081 = vperm.xlu1 %3302, %v4487_v38   ;;  %v4499_v57 = vpop.eup %3470 }
 0x3eb   : > { %v4501_v26 = vpop.eup %3472 }
 0x3ec   : > { %v4505_v0 = vpop.eup %3474 }
 0x3ed   : > { %2090 = vperm.xlu0 %3301, %v4492_v56   ;;  %v4507_v37 = vpop.eup %3476 }
 0x3ee   : > { %2087 = vperm.xlu1 %3302, %v4495_v51   ;;  %v4511_v52 = vpop.eup %3478 }
 0x3ef   : > { %v4513_v8 = vpop.eup %3480 }
 0x3f0   : > { %v4517_v10 = vpop.eup %3482 }
 0x3f1   : > { %2096 = vperm.xlu0 %3301, %v4499_v57   ;;  %v4519_v19 = vpop.eup %3484 }
 0x3f2   : > { %2093 = vperm.xlu1 %3302, %v4501_v26   ;;  %v4523_v29 = vpop.eup %3486 }
 0x3f3   : > { %v4525_v58 = vpop.eup %3488 }
 0x3f5   : > { %2102 = vperm.xlu0 %3301, %v4505_v0  }
 0x3f6   : > { %2099 = vperm.xlu1 %3302, %v4507_v37  }
 0x3f9   : > { %2108 = vperm.xlu0 %3301, %v4511_v52  }
 0x3fa   : > { %2105 = vperm.xlu1 %3302, %v4513_v8  }
 0x3fd   : > { %2114 = vperm.xlu0 %3301, %v4517_v10  }
 0x3fe   : > { %2111 = vperm.xlu1 %3302, %v4519_v19  }
 0x401   : > { %2120 = vperm.xlu0 %3301, %v4523_v29  }
 0x402   : > { %2117 = vperm.xlu1 %3302, %v4525_v58  }
 0x40d   : > { %v1863_v27 = vpop.xlane.xlu0 %1862 }
 0x40e   : > { %v1901_v23 = vrot.slane %v1863_v27, %v3941_v11  ;;  %v1905_v54 = vrot.slane %v1863_v27, %v3953_v15  ;;  %v1909_v46 = vrot.slane %v1863_v27, %v3956_v16  ;;  %v1913_v45 = vrot.slane %v1863_v27, %v3973_v24 }
 0x40f   : > { %v1921_v7 = vrot.slane %v1863_v27, %v3999_v42  ;;  %v1925_v21 = vrot.slane %v1863_v27, %v4014_v55 }
 0x410   : > { %v1962_v36 = vsub.f32 %v4329_v48, %v1901_v23  ;;  %v1963_v18 = vsub.f32 %v4334_v43, %v1901_v23  ;;  %v1964_v40 = vsub.f32 %v4338_v20, %v1905_v54  ;;  %v1965_v61 = vsub.f32 %v4342_v32, %v1905_v54 }
 0x411   : > { %v1966_v35 = vsub.f32 %v4346_v44, %v1909_v46  ;;  %v1967_v62 = vsub.f32 %v4350_v33, %v1909_v46  ;;  %v1917_v43 = vrot.slane %v1863_v27, %v3980_v30  ;;  %v1968_v47 = vsub.f32 %v4354_v60, %v1913_v45 }
 0x412   : > { %v2010_v13 = vmul.f32 1.442695, %v1962_v36  ;;  %v2012_v49 = vmul.f32 1.442695, %v1963_v18  ;;  %v2014_v63 = vmul.f32 1.442695, %v1964_v40  ;;  %v1969_v32 = vsub.f32 %v4358_v1, %v1913_v45 }
 0x413   : > { %v2016_v48 = vmul.f32 1.442695, %v1965_v61  ;;  %v2018_v20 = vmul.f32 1.442695, %v1966_v35  ;;  %v2020_v6 = vmul.f32 1.442695, %v1967_v62  ;;  %v1970_v44 = vsub.f32 %v4362_v4, %v1917_v43 }
 0x414   : > { %3490 = vpow2.f32 %v2010_v13  ;;  %v2022_v5 = vmul.f32 1.442695, %v1968_v47  ;;  %v1971_v33 = vsub.f32 %v4366_v17, %v1917_v43  ;;  %v2024_v25 = vmul.f32 1.442695, %v1969_v32  ;;  %v4893_v18 = vld [vmem:[#allocation28_spill] sm:$0xff] }
 0x415   : > { %3492 = vpow2.f32 %v2012_v49  ;;  %v1972_v60 = vsub.f32 %v4370_v9, %v1921_v7  ;;  %v2026_v28 = vmul.f32 1.442695, %v1970_v44  ;;  %v1973_v1 = vsub.f32 %v4374_v22, %v1921_v7 }
 0x416   : > { %3494 = vpow2.f32 %v2014_v63  ;;  %v2028_v41 = vmul.f32 1.442695, %v1971_v33  ;;  %v1929_v4 = vrot.slane %v1863_v27, %v4031_v2  ;;  %v1974_v17 = vsub.f32 %v4378_v3, %v1925_v21  ;;  %v4894_v3 = vld [vmem:[#allocation29_spill] sm:$0xff] }
 0x417   : > { %3496 = vpow2.f32 %v2016_v48  ;;  %v2030_v9 = vmul.f32 1.442695, %v1972_v60  ;;  %v1975_v54 = vsub.f32 %v4382_v31, %v1925_v21  ;;  %v2032_v22 = vmul.f32 1.442695, %v1973_v1 }
 0x418   : > { %3498 = vpow2.f32 %v2018_v20  ;;  %v1976_v46 = vsub.f32 %v4893_v18, %v1929_v4  ;;  %v2034_v27 = vmul.f32 1.442695, %v1974_v17  ;;  %v1977_v61 = vsub.f32 %v4894_v3, %v1929_v4 }
 0x419   : > { %3500 = vpow2.f32 %v2020_v6  ;;  %v2036_v13 = vmul.f32 1.442695, %v1975_v54 }
 0x41a   : > { %3502 = vpow2.f32 %v2022_v5  ;;  %v2038_v31 = vmul.f32 1.442695, %v1976_v46  ;;  %v2040_v35 = vmul.f32 1.442695, %v1977_v61 }
 0x41b   : > { %3504 = vpow2.f32 %v2024_v25 }
 0x41c   : > { %3506 = vpow2.f32 %v2026_v28 }
 0x41d   : > { %3508 = vpow2.f32 %v2028_v41 }
 0x41e   : > { %3510 = vpow2.f32 %v2030_v9 }
 0x41f   : > { %3512 = vpow2.f32 %v2032_v22 }
 0x420   : > { %3514 = vpow2.f32 %v2034_v27 }
 0x421   : > { %v4547_v59 = vpop.eup %3490  ;;  %3516 = vpow2.f32 %v2036_v13 }
 0x422   : > { %v4550_v53 = vpop.eup %3492  ;;  %2123 = vperm.xlu1 %3302, %v4547_v59   ;;  %3518 = vpow2.f32 %v2038_v31 }
 0x423   : > { %2126 = vperm.xlu0 %3301, %v4550_v53   ;;  %v4556_v23 = vpop.eup %3494  ;;  %3520 = vpow2.f32 %v2040_v35 }
 0x424   : > { %v4559_v36 = vpop.eup %3496 }
 0x425   : > { %v4564_v40 = vpop.eup %3498 }
 0x426   : > { %2129 = vperm.xlu1 %3302, %v4556_v23   ;;  %v4567_v49 = vpop.eup %3500 }
 0x427   : > { %2132 = vperm.xlu0 %3301, %v4559_v36   ;;  %v4571_v45 = vpop.eup %3502 }
 0x428   : > { %v4573_v63 = vpop.eup %3504 }
 0x429   : > { %v4577_v62 = vpop.eup %3506 }
 0x42a   : > { %2135 = vperm.xlu1 %3302, %v4564_v40   ;;  %v4579_v48 = vpop.eup %3508 }
 0x42b   : > { %2138 = vperm.xlu0 %3301, %v4567_v49   ;;  %v4583_v43 = vpop.eup %3510 }
 0x42c   : > { %v4585_v47 = vpop.eup %3512 }
 0x42d   : > { %v4589_v20 = vpop.eup %3514 }
 0x42e   : > { %2141 = vperm.xlu1 %3302, %v4571_v45   ;;  %v4591_v32 = vpop.eup %3516 }
 0x42f   : > { %2144 = vperm.xlu0 %3301, %v4573_v63   ;;  %v4595_v6 = vpop.eup %3518 }
 0x430   : > { %4895 = vst [vmem:[#allocation28_spill] sm:$0xff] %v4595_v6  ;;  %v4597_v7 = vpop.eup %3520 }
 0x432   : > { %2147 = vperm.xlu1 %3302, %v4577_v62  }
 0x433   : > { %2150 = vperm.xlu0 %3301, %v4579_v48  }
 0x436   : > { %2153 = vperm.xlu1 %3302, %v4583_v43  }
 0x437   : > { %2156 = vperm.xlu0 %3301, %v4585_v47  }
 0x43a   : > { %2159 = vperm.xlu1 %3302, %v4589_v20  }
 0x43b   : > { %2162 = vperm.xlu0 %3301, %v4591_v32  }
 0x43e   : > { %2165 = vperm.xlu1 %3302, %v4595_v6  }
 0x43f   : > { %2168 = vperm.xlu0 %3301, %v4597_v7  }
 0x460   : > { %v2076_v44 = vpop.permute.xlu0 %2075 }
 0x461   : > { %v2079_v5 = vpop.permute.xlu1 %2078  ;;  %v2173_v3 = vrot.slane %v2076_v44, %v3944_v12 }
 0x462   : > { %v2177_v27 = vrot.slane %v2079_v5, %v3950_v14 }
 0x464   : > { %v2085_v33 = vpop.permute.xlu0 %2084 }
 0x465   : > { %v2082_v25 = vpop.permute.xlu1 %2081  ;;  %v2186_v9 = vrot.slane %v2085_v33, %v3950_v14 }
 0x466   : > { %v2182_v17 = vrot.slane %v2082_v25, %v3944_v12 }
 0x468   : > { %v2091_v21 = vpop.permute.xlu0 %2090  ;;  %v2187_v33 = vsel %vm1697_vm3, %v2186_v9, %v2182_v17 }
 0x469   : > { %v2088_v60 = vpop.permute.xlu1 %2087  ;;  %v2195_v18 = vrot.slane %v2091_v21, %v3950_v14 }
 0x46a   : > { %v2191_v22 = vrot.slane %v2088_v60, %v3944_v12 }
 0x46c   : > { %v2097_v28 = vpop.permute.xlu0 %2096  ;;  %v2196_v6 = vsel %vm1697_vm3, %v2195_v18, %v2191_v22 }
 0x46d   : > { %v2094_v1 = vpop.permute.xlu1 %2093  ;;  %v2204_v13 = vrot.slane %v2097_v28, %v3950_v14 }
 0x46e   : > { %v2200_v61 = vrot.slane %v2094_v1, %v3944_v12  ;;  %v2178_v1 = vsel %vm1697_vm3, %v2177_v27, %v2173_v3 }
 0x470   : > { %v2103_v41 = vpop.permute.xlu0 %2102  ;;  %v2205_v28 = vsel %vm1697_vm3, %v2204_v13, %v2200_v61 }
 0x471   : > { %v2100_v4 = vpop.permute.xlu1 %2099  ;;  %v2213_v35 = vrot.slane %v2103_v41, %v3950_v14  ;;  %v2314_v41 = vsel %vm1834_vm4, %v2187_v33, %v2178_v1 }
 0x472   : > { %v2209_v31 = vrot.slane %v2100_v4, %v3944_v12  ;;  %v2315_v9 = vsel %vm1836_vm5, %v2196_v6, %v2314_v41 }
 0x473   : > { %v2316_v22 = vsel %vm1838_vm6, %v2205_v28, %v2315_v9 }
 0x474   : > { %v2109_v54 = vpop.permute.xlu0 %2108  ;;  %v2214_v17 = vsel %vm1697_vm3, %v2213_v35, %v2209_v31 }
 0x475   : > { %v2106_v46 = vpop.permute.xlu1 %2105  ;;  %v2222_v60 = vrot.slane %v2109_v54, %v3950_v14  ;;  %v2317_v3 = vsel %vm1840_vm7, %v2214_v17, %v2316_v22 }
 0x476   : > { %v2218_v25 = vrot.slane %v2106_v46, %v3944_v12 }
 0x478   : > { %v2115_v21 = vpop.permute.xlu0 %2114  ;;  %v2223_v54 = vsel %vm1697_vm3, %v2222_v60, %v2218_v25 }
 0x479   : > { %v2112_v5 = vpop.permute.xlu1 %2111  ;;  %v2231_v44 = vrot.slane %v2115_v21, %v3950_v14  ;;  %v2318_v13 = vsel %vm1842_vm8, %v2223_v54, %v2317_v3 }
 0x47a   : > { %v2227_v4 = vrot.slane %v2112_v5, %v3944_v12 }
 0x47c   : > { %v2121_v46 = vpop.permute.xlu0 %2120  ;;  %v2232_v18 = vsel %vm1697_vm3, %v2231_v44, %v2227_v4 }
 0x47d   : > { %v2118_v21 = vpop.permute.xlu1 %2117  ;;  %v2240_v27 = vrot.slane %v2121_v46, %v3950_v14  ;;  %v2319_v6 = vsel %vm1844_vm9, %v2232_v18, %v2318_v13 }
 0x47e   : > { %v2236_v61 = vrot.slane %v2118_v21, %v3944_v12 }
 0x480   : > { %v2241_v31 = vsel %vm1697_vm3, %v2240_v27, %v2236_v61 }
 0x481   : > { %v2320_v35 = vsel %vm1846_vm10, %v2241_v31, %v2319_v6 }
 0x482   : > { %v2330_v33 = vsel %vm1857_vm11, %v2320_v35, 0.0 }
 0x483   : > { %2331 = vadd.xlane.f32.xlu1 %v2330_v33 }
 0x49d   : > { %v2124_v25 = vpop.permute.xlu1 %2123 }
 0x49e   : > { %v2127_v60 = vpop.permute.xlu0 %2126  ;;  %v2245_v3 = vrot.slane %v2124_v25, %v3944_v12 }
 0x49f   : > { %v2249_v61 = vrot.slane %v2127_v60, %v3950_v14 }
 0x4a1   : > { %v2130_v5 = vpop.permute.xlu1 %2129 }
 0x4a2   : > { %v2133_v44 = vpop.permute.xlu0 %2132  ;;  %v2254_v54 = vrot.slane %v2130_v5, %v3944_v12 }
 0x4a3   : > { %v2258_v46 = vrot.slane %v2133_v44, %v3950_v14 }
 0x4a5   : > { %v2136_v1 = vpop.permute.xlu1 %2135  ;;  %v2259_v33 = vsel %vm1697_vm3, %v2258_v46, %v2254_v54 }
 0x4a6   : > { %v2139_v28 = vpop.permute.xlu0 %2138  ;;  %v2263_v18 = vrot.slane %v2136_v1, %v3944_v12 }
 0x4a7   : > { %v2267_v21 = vrot.slane %v2139_v28, %v3950_v14 }
 0x4a9   : > { %v2142_v4 = vpop.permute.xlu1 %2141  ;;  %v2268_v28 = vsel %vm1697_vm3, %v2267_v21, %v2263_v18 }
 0x4aa   : > { %v2145_v41 = vpop.permute.xlu0 %2144  ;;  %v2272_v13 = vrot.slane %v2142_v4, %v3944_v12  ;;  %v2250_v4 = vsel %vm1697_vm3, %v2249_v61, %v2245_v3 }
 0x4ab   : > { %v2276_v31 = vrot.slane %v2145_v41, %v3950_v14 }
 0x4ad   : > { %v2148_v17 = vpop.permute.xlu1 %2147  ;;  %v2277_v41 = vsel %vm1697_vm3, %v2276_v31, %v2272_v13 }
 0x4ae   : > { %v2151_v9 = vpop.permute.xlu0 %2150  ;;  %v2281_v6 = vrot.slane %v2148_v17, %v3944_v12 }
 0x4af   : > { %v2285_v35 = vrot.slane %v2151_v9, %v3950_v14  ;;  %v2321_v9 = vsel %vm1834_vm4, %v2259_v33, %v2250_v4 }
 0x4b0   : > { %v2322_v46 = vsel %vm1836_vm5, %v2268_v28, %v2321_v9 }
 0x4b1   : > { %v2154_v22 = vpop.permute.xlu1 %2153  ;;  %v2286_v54 = vsel %vm1697_vm3, %v2285_v35, %v2281_v6  ;;  %v2323_v18 = vsel %vm1838_vm6, %v2277_v41, %v2322_v46 }
 0x4b2   : > { %v2157_v27 = vpop.permute.xlu0 %2156  ;;  %v2290_v5 = vrot.slane %v2154_v22, %v3944_v12  ;;  %v2324_v61 = vsel %vm1840_vm7, %v2286_v54, %v2323_v18 }
 0x4b3   : > { %v2294_v44 = vrot.slane %v2157_v27, %v3950_v14 }
 0x4b5   : > { %v2160_v1 = vpop.permute.xlu1 %2159  ;;  %v2295_v22 = vsel %vm1697_vm3, %v2294_v44, %v2290_v5 }
 0x4b6   : > { %v2299_v25 = vrot.slane %v2160_v1, %v3944_v12  ;;  %v2163_v60 = vpop.permute.xlu0 %2162  ;;  %v2325_v31 = vsel %vm1842_vm8, %v2295_v22, %v2324_v61 }
 0x4b7   : > { %v2303_v17 = vrot.slane %v2163_v60, %v3950_v14 }
 0x4b9   : > { %v2166_v27 = vpop.permute.xlu1 %2165  ;;  %v2304_v21 = vsel %vm1697_vm3, %v2303_v17, %v2299_v25 }
 0x4ba   : > { %v2308_v1 = vrot.slane %v2166_v27, %v3944_v12  ;;  %v2169_v3 = vpop.permute.xlu0 %2168  ;;  %v2326_v35 = vsel %vm1844_vm9, %v2304_v21, %v2325_v31 }
 0x4bb   : > { %v2312_v13 = vrot.slane %v2169_v3, %v3950_v14 }
 0x4bd   : > { %v2313_v6 = vsel %vm1697_vm3, %v2312_v13, %v2308_v1 }
 0x4be   : > { %v2327_v33 = vsel %vm1846_vm10, %v2313_v6, %v2326_v35  ;;  %v2799_v35 = vld [vmem:[#allocation7 + $0x58] sm:$0xff] }
 0x4bf   : > { %v2333_v5 = vsel %vm1857_vm11, %v2327_v33, 0.0  ;;  %v2798_v33 = vld [vmem:[#allocation7 + $0x50] sm:$0xff] }
 0x4c0   : > { %2334 = vadd.xlane.f32.xlu0 %v2333_v5  ;;  %v2793_v5 = vld [vmem:[#allocation7 + $0x28] sm:$0xff] }
 0x50c   : > { %v2332_v44 = vpop.xlane.xlu1 %2331 }
 0x50d   : > { %3522 = vrcp.f32 %v2332_v44  ;;  %v2792_v44 = vld [vmem:[#allocation7 + $0x20] sm:$0xff] }
 0x51a   : > { %v3523_v28 = vpop.eup %3522 }
 0x51b   : > { %v2343_v12 = vrot.slane %v3523_v28, %v3941_v11  ;;  %v2347_v60 = vrot.slane %v3523_v28, %v3953_v15  ;;  %v2351_v17 = vrot.slane %v3523_v28, %v3956_v16 }
 0x51d   : > { %v2421_v25 = vmul.f32 %v4478_v34, %v2343_v12  ;;  %v2420_v14 = vmul.f32 %v4475_v50, %v2343_v12  ;;  %v2422_v4 = vmul.f32 %v4487_v38, %v2347_v60  ;;  %v2423_v41 = vmul.f32 %v4484_v39, %v2347_v60  ;;  %v2790_v12 = vld [vmem:[#allocation7 + $0x10] sm:$0xff]  ;;  %v4897_v60 = vld [vmem:[#allocation12_spill] sm:$0xff] }
 0x51e   : > { %v2424_v9 = vmul.f32 %v4495_v51, %v2351_v17  ;;  %v2425_v54 = vmul.f32 %v4492_v56, %v2351_v17  ;;  %v2355_v34 = vrot.slane %v3523_v28, %v3973_v24  ;;  %v2359_v38 = vrot.slane %v3523_v28, %v3980_v30 }
 0x51f   : > { %2491 = vperm.xlu1 %3302, %v2421_v25   ;;  %2486 = vperm.xlu0 %3301, %v2420_v14   ;;  %v2363_v51 = vrot.slane %v3523_v28, %v3999_v42  ;;  %v2789_v25 = vld [vmem:[#allocation7 + $0x8] sm:$0xff]  ;;  %v2788_v14 = vld [vmem:[#allocation7] sm:$0xff] }
 0x520   : > { %v2426_v50 = vmul.f32 %v4501_v26, %v2355_v34  ;;  %v2427_v46 = vmul.f32 %v4499_v57, %v2355_v34  ;;  %v2428_v39 = vmul.f32 %v4507_v37, %v2359_v38  ;;  %v2429_v22 = vmul.f32 %v4505_v0, %v2359_v38 }
 0x521   : > { %v2430_v56 = vmul.f32 %v4513_v8, %v2363_v51  ;;  %v2431_v27 = vmul.f32 %v4511_v52, %v2363_v51  ;;  %v2367_v26 = vrot.slane %v3523_v28, %v4014_v55  ;;  %v2371_v37 = vrot.slane %v3523_v28, %v4031_v2  ;;  %v2791_v28 = vld [vmem:[#allocation7 + $0x18] sm:$0xff] }
 0x523   : > { %2496 = vperm.xlu1 %3302, %v2422_v4   ;;  %2501 = vperm.xlu0 %3301, %v2423_v41   ;;  %v2432_v57 = vmul.f32 %v4519_v19, %v2367_v26  ;;  %v2433_v18 = vmul.f32 %v4517_v10, %v2367_v26  ;;  %v2434_v0 = vmul.f32 %v4525_v58, %v2371_v37  ;;  %v2453_v4 = vunpack.c.h.bf16 %v4897_v60 }
 0x524   : > { %v2435_v21 = vmul.f32 %v4523_v29, %v2371_v37  ;;  %v2452_v41 = vunpack.c.l.bf16 %v4897_v60  ;;  %v4899_v37 = vld [vmem:[#allocation15_spill] sm:$0xff] }
 0x527   : > { %2506 = vperm.xlu1 %3302, %v2424_v9   ;;  %2511 = vperm.xlu0 %3301, %v2425_v54  }
 0x52b   : > { %2516 = vperm.xlu1 %3302, %v2426_v50   ;;  %2521 = vperm.xlu0 %3301, %v2427_v46   ;;  %v4898_v46 = vld [vmem:[#allocation13_spill] sm:$0xff] }
 0x52c   : > { %v2454_v38 = vunpack.c.l.bf16 %v4898_v46 }
 0x52f   : > { %2526 = vperm.xlu1 %3302, %v2428_v39   ;;  %2531 = vperm.xlu0 %3301, %v2429_v22   ;;  %v2455_v39 = vunpack.c.h.bf16 %v4898_v46 }
 0x533   : > { %2536 = vperm.xlu1 %3302, %v2430_v56   ;;  %2541 = vperm.xlu0 %3301, %v2431_v27  }
 0x537   : > { %2546 = vperm.xlu1 %3302, %v2432_v57   ;;  %2551 = vperm.xlu0 %3301, %v2433_v18  }
 0x53b   : > { %2556 = vperm.xlu1 %3302, %v2434_v0   ;;  %2561 = vperm.xlu0 %3301, %v2435_v21   ;;  %v2456_v0 = vunpack.c.l.bf16 %v4899_v37  ;;  %v2457_v21 = vunpack.c.h.bf16 %v4899_v37 }
 0x549   : > { %v2335_v8 = vpop.xlane.xlu0 %2334 }
 0x54a   : > { %3524 = vrcp.f32 %v2335_v8 }
 0x557   : > { %v3525_v52 = vpop.eup %3524 }
 0x558   : > { %v2375_v1 = vrot.slane %v3525_v52, %v3941_v11  ;;  %v2379_v10 = vrot.slane %v3525_v52, %v3953_v15  ;;  %v2383_v29 = vrot.slane %v3525_v52, %v3956_v16 }
 0x55a   : > { %v2437_v3 = vmul.f32 %v4550_v53, %v2375_v1  ;;  %v2436_v19 = vmul.f32 %v4547_v59, %v2375_v1  ;;  %v2439_v61 = vmul.f32 %v4559_v36, %v2379_v10  ;;  %v2438_v58 = vmul.f32 %v4556_v23, %v2379_v10 }
 0x55b   : > { %v2441_v13 = vmul.f32 %v4567_v49, %v2383_v29  ;;  %v2440_v11 = vmul.f32 %v4564_v40, %v2383_v29  ;;  %v2387_v53 = vrot.slane %v3525_v52, %v3973_v24  ;;  %v2391_v36 = vrot.slane %v3525_v52, %v3980_v30  ;;  %v2803_v40 = vld [vmem:[#allocation7 + $0x78] sm:$0xff]  ;;  %v2802_v24 = vld [vmem:[#allocation7 + $0x70] sm:$0xff]  ;;  %v2801_v30 = vld [vmem:[#allocation7 + $0x68] sm:$0xff] }
 0x55c   : > { %2571 = vperm.xlu0 %3301, %v2437_v3   ;;  %2566 = vperm.xlu1 %3302, %v2436_v19   ;;  %v2395_v49 = vrot.slane %v3525_v52, %v3999_v42 }
 0x55d   : > { %v2443_v15 = vmul.f32 %v4573_v63, %v2387_v53  ;;  %v2442_v59 = vmul.f32 %v4571_v45, %v2387_v53  ;;  %v2445_v16 = vmul.f32 %v4579_v48, %v2391_v36  ;;  %v2444_v23 = vmul.f32 %v4577_v62, %v2391_v36  ;;  %3177 = vmatprep.subr.mxu0 %v2803_v40 }
 0x55e   : > { %v2447_v31 = vmul.f32 %v4585_v47, %v2395_v49  ;;  %v2446_v63 = vmul.f32 %v4583_v43, %v2395_v49  ;;  %v2399_v45 = vrot.slane %v3525_v52, %v4014_v55  ;;  %3178 = vmatpush3.msra.mxu0 %v2803_v40  ;;  %v2403_v48 = vrot.slane %v3525_v52, %v4031_v2  ;;  %v2800_v47 = vld [vmem:[#allocation7 + $0x60] sm:$0xff]  ;;  %v4901_v40 = vld [vmem:[#allocation18_spill] sm:$0xff] }
 0x55f   : > { %3179 = vmatprep.subr.mxu0 %v2802_v24  ;;  %v4896_v55 = vld [vmem:[#allocation28_spill] sm:$0xff] }
 0x560   : > { %2581 = vperm.xlu0 %3301, %v2439_v61   ;;  %2576 = vperm.xlu1 %3302, %v2438_v58   ;;  %v2449_v62 = vmul.f32 %v4591_v32, %v2399_v45  ;;  %v2448_v42 = vmul.f32 %v4589_v20, %v2399_v45  ;;  %v2451_v43 = vmul.f32 %v4597_v7, %v2403_v48  ;;  %v2797_v20 = vld [vmem:[#allocation7 + $0x48] sm:$0xff]  ;;  %v2796_v2 = vld [vmem:[#allocation7 + $0x40] sm:$0xff]  ;;  %v2795_v32 = vld [vmem:[#allocation7 + $0x38] sm:$0xff] }
 0x561   : > { %3180 = vmatpush3.msra.mxu0 %v2802_v24  ;;  %v2450_v6 = vmul.f32 %v4896_v55, %v2403_v48  ;;  %v2794_v7 = vld [vmem:[#allocation7 + $0x30] sm:$0xff]  ;;  %v2460_v24 = vunpack.c.l.bf16 %v4901_v40 }
 0x562   : > { %3181 = vmatprep.subr.mxu0 %v2801_v30 }
 0x563   : > { %3182 = vmatpush3.msra.mxu0 %v2801_v30  ;;  %v2461_v30 = vunpack.c.h.bf16 %v4901_v40 }
 0x564   : > { %2591 = vperm.xlu0 %3301, %v2441_v13   ;;  %2586 = vperm.xlu1 %3302, %v2440_v11   ;;  %v4900_v13 = vld [vmem:[#allocation16_spill] sm:$0xff] }
 0x565   : > { %3183 = vmatprep.subr.mxu0 %v2800_v47  ;;  %v2458_v11 = vunpack.c.l.bf16 %v4900_v13 }
 0x566   : > { %3184 = vmatpush3.msra.mxu0 %v2800_v47 }
 0x567   : > { %3185 = vmatprep.subr.mxu0 %v2799_v35 }
 0x568   : > { %2601 = vperm.xlu0 %3301, %v2443_v15   ;;  %2596 = vperm.xlu1 %3302, %v2442_v59   ;;  %v2459_v15 = vunpack.c.h.bf16 %v4900_v13 }
 0x569   : > { %3186 = vmatpush3.msra.mxu0 %v2799_v35 }
 0x56a   : > { %3187 = vmatprep.subr.mxu0 %v2798_v33 }
 0x56b   : > { %3188 = vmatpush3.msra.mxu0 %v2798_v33  ;;  %v4902_v33 = vld [vmem:[#allocation14_spill] sm:$0xff] }
 0x56c   : > { %2611 = vperm.xlu0 %3301, %v2445_v16   ;;  %2606 = vperm.xlu1 %3302, %v2444_v23  }
 0x56d   : > { %3189 = vmatprep.subr.mxu0 %v2797_v20 }
 0x56e   : > { %3190 = vmatpush3.msra.mxu0 %v2797_v20  ;;  %v2462_v20 = vunpack.c.l.bf16 %v4902_v33 }
 0x56f   : > { %3191 = vmatprep.subr.mxu0 %v2796_v2 }
 0x570   : > { %2621 = vperm.xlu0 %3301, %v2447_v31   ;;  %2616 = vperm.xlu1 %3302, %v2446_v63  }
 0x571   : > { %3192 = vmatpush3.msra.mxu0 %v2796_v2 }
 0x572   : > { %3193 = vmatprep.subr.mxu0 %v2795_v32 }
 0x573   : > { %3194 = vmatpush3.msra.mxu0 %v2795_v32 }
 0x574   : > { %2631 = vperm.xlu0 %3301, %v2449_v62   ;;  %2626 = vperm.xlu1 %3302, %v2448_v42  }
 0x575   : > { %3195 = vmatprep.subr.mxu0 %v2794_v7 }
 0x576   : > { %3196 = vmatpush3.msra.mxu0 %v2794_v7 }
 0x577   : > { %3197 = vmatprep.subr.mxu0 %v2793_v5 }
 0x578   : > { %2641 = vperm.xlu0 %3301, %v2451_v43   ;;  %2636 = vperm.xlu1 %3302, %v2450_v6  }
 0x579   : > { %3198 = vmatpush3.msra.mxu0 %v2793_v5 }
 0x57a   : > { %3199 = vmatprep.subr.mxu0 %v2792_v44 }
 0x57b   : > { %3200 = vmatpush3.msra.mxu0 %v2792_v44 }
 0x57c   : > { %3201 = vmatprep.subr.mxu0 %v2791_v28 }
 0x57d   : > { %3202 = vmatpush3.msra.mxu0 %v2791_v28 }
 0x57e   : > { %3203 = vmatprep.subr.mxu0 %v2790_v12 }
 0x57f   : > { %3204 = vmatpush3.msra.mxu0 %v2790_v12  ;;  %v2463_v12 = vunpack.c.h.bf16 %v4902_v33 }
 0x580   : > { %3205 = vmatprep.subr.mxu0 %v2789_v25 }
 0x581   : > { %3206 = vmatpush3.msra.mxu0 %v2789_v25 }
 0x582   : > { %3207 = vmatprep.subr.mxu0 %v2788_v14 }
 0x583   : > { %3208 = vmatpush3.msra.mxu0 %v2788_v14 }
 0x59a   : > { %v2492_v17 = vpop.permute.xlu1 %2491  ;;  %v2487_v9 = vpop.permute.xlu0 %2486 }
 0x59b   : > { %v2645_v54 = vmul.f32 %v2492_v17, %v2453_v4  ;;  %v2644_v34 = vmul.f32 %v2487_v9, %v2452_v41 }
 0x59d   : > { %v2676_v50 = vadd.f32 %v2645_v54, %v2644_v34 }
 0x59e   : > { %v2497_v22 = vpop.permute.xlu1 %2496  ;;  %v2502_v51 = vpop.permute.xlu0 %2501 }
 0x59f   : > { %v2677_v56 = vrot.slane %v2676_v50, 4  ;;  %v2646_v27 = vmul.f32 %v2497_v22, %v2454_v38  ;;  %v2647_v26 = vmul.f32 %v2502_v51, %v2455_v39 }
 0x5a1   : > { %v2678_v57 = vadd.f32 %v2677_v56, %v2676_v50  ;;  %v2683_v18 = vadd.f32 %v2647_v26, %v2646_v27  ;;  %v4903_v50 = vld [vmem:[#allocation17_spill] sm:$0xff] }
 0x5a2   : > { %v2507_v8 = vpop.permute.xlu1 %2506  ;;  %v2512_v52 = vpop.permute.xlu0 %2511  ;;  %v2464_v46 = vunpack.c.l.bf16 %v4903_v50  ;;  %v2465_v38 = vunpack.c.h.bf16 %v4903_v50 }
 0x5a3   : > { %v2679_v1 = vrot.slane %v2678_v57, 2  ;;  %v2684_v3 = vrot.slane %v2683_v18, 4  ;;  %v2648_v19 = vmul.f32 %v2507_v8, %v2456_v0  ;;  %v2649_v10 = vmul.f32 %v2512_v52, %v2457_v21  ;;  %v4904_v52 = vld [vmem:[#allocation19_spill] sm:$0xff] }
 0x5a5   : > { %v2680_v61 = vadd.f32 %v2679_v1, %v2678_v57  ;;  %v2685_v58 = vadd.f32 %v2684_v3, %v2683_v18  ;;  %v2690_v29 = vadd.f32 %v2649_v10, %v2648_v19  ;;  %v2466_v1 = vunpack.c.l.bf16 %v4904_v52 }
 0x5a6   : > { %v2517_v53 = vpop.permute.xlu1 %2516  ;;  %v2522_v59 = vpop.permute.xlu0 %2521  ;;  %v2467_v3 = vunpack.c.h.bf16 %v4904_v52 }
 0x5a7   : > { %v2686_v36 = vrot.slane %v2685_v58, 2  ;;  %v2691_v16 = vrot.slane %v2690_v29, 4  ;;  %v2650_v23 = vmul.f32 %v2517_v53, %v2458_v11  ;;  %v2651_v49 = vmul.f32 %v2522_v59, %v2459_v15 }
 0x5a8   : > { %v2681_v31 = vrot.slane %v2680_v61, 1 }
 0x5a9   : > { %v2687_v63 = vadd.f32 %v2686_v36, %v2685_v58  ;;  %v2692_v45 = vadd.f32 %v2691_v16, %v2690_v29  ;;  %v2697_v62 = vadd.f32 %v2651_v49, %v2650_v23 }
 0x5aa   : > { %v2527_v42 = vpop.permute.xlu1 %2526  ;;  %v2532_v48 = vpop.permute.xlu0 %2531  ;;  %v2682_v2 = vadd.f32 %v2681_v31, %v2680_v61 }
 0x5ab   : > { %v2688_v47 = vrot.slane %v2687_v63, 1  ;;  %v2693_v43 = vrot.slane %v2692_v45, 2  ;;  %v2652_v55 = vmul.f32 %v2527_v42, %v2460_v24  ;;  %v2653_v6 = vmul.f32 %v2532_v48, %v2461_v30 }
 0x5ac   : > { %v2698_v35 = vrot.slane %v2697_v62, 4 }
 0x5ad   : > { %v2689_v32 = vadd.f32 %v2688_v47, %v2687_v63  ;;  %v2694_v7 = vadd.f32 %v2693_v43, %v2692_v45  ;;  %v2704_v5 = vadd.f32 %v2653_v6, %v2652_v55 }
 0x5ae   : > { %v2699_v44 = vadd.f32 %v2698_v35, %v2697_v62  ;;  %v2537_v28 = vpop.permute.xlu1 %2536  ;;  %v2542_v25 = vpop.permute.xlu0 %2541 }
 0x5af   : > { %v2827_v14 = vsel %vm1834_vm4, %v2689_v32, %v2682_v2  ;;  %v2695_v60 = vrot.slane %v2694_v7, 1  ;;  %v2705_v4 = vrot.slane %v2704_v5, 4  ;;  %v2654_v41 = vmul.f32 %v2537_v28, %v2462_v20  ;;  %v4905_v2 = vld [vmem:[#allocation20_spill] sm:$0xff] }
 0x5b0   : > { %v2700_v17 = vrot.slane %v2699_v44, 2  ;;  %v2655_v9 = vmul.f32 %v2542_v25, %v2463_v12  ;;  %v2468_v32 = vunpack.c.l.bf16 %v4905_v2 }
 0x5b1   : > { %v2696_v54 = vadd.f32 %v2695_v60, %v2694_v7  ;;  %v2706_v34 = vadd.f32 %v2705_v4, %v2704_v5  ;;  %v2469_v7 = vunpack.c.h.bf16 %v4905_v2 }
 0x5b2   : > { %v2701_v39 = vadd.f32 %v2700_v17, %v2699_v44  ;;  %v2711_v22 = vadd.f32 %v2655_v9, %v2654_v41  ;;  %v2547_v51 = vpop.permute.xlu1 %2546  ;;  %v2552_v56 = vpop.permute.xlu0 %2551 }
 0x5b3   : > { %v2707_v27 = vrot.slane %v2706_v34, 2  ;;  %v2656_v26 = vmul.f32 %v2547_v51, %v2464_v46  ;;  %v2657_v57 = vmul.f32 %v2552_v56, %v2465_v38  ;;  %v2828_v18 = vsel %vm1836_vm5, %v2696_v54, %v2827_v14  ;;  %v4906_v14 = vld [vmem:[#allocation21_spill] sm:$0xff]  ;;  %v4907_v38 = vld [vmem:[#allocation22_spill] sm:$0xff] }
 0x5b4   : > { %v2702_v37 = vrot.slane %v2701_v39, 1  ;;  %v2712_v0 = vrot.slane %v2711_v22, 4  ;;  %v2470_v60 = vunpack.c.l.bf16 %v4906_v14  ;;  %v2471_v4 = vunpack.c.h.bf16 %v4906_v14 }
 0x5b5   : > { %v2708_v21 = vadd.f32 %v2707_v27, %v2706_v34  ;;  %v2718_v8 = vadd.f32 %v2657_v57, %v2656_v26 }
 0x5b6   : > { %v2703_v19 = vadd.f32 %v2702_v37, %v2701_v39  ;;  %v2713_v10 = vadd.f32 %v2712_v0, %v2711_v22  ;;  %v2557_v61 = vpop.permute.xlu1 %2556  ;;  %v2562_v58 = vpop.permute.xlu0 %2561  ;;  %v2472_v39 = vunpack.c.l.bf16 %v4907_v38  ;;  %v2473_v22 = vunpack.c.h.bf16 %v4907_v38 }
 0x5b7   : > { %v2709_v29 = vrot.slane %v2708_v21, 1  ;;  %v2719_v13 = vrot.slane %v2718_v8, 4  ;;  %v2658_v11 = vmul.f32 %v2557_v61, %v2466_v1  ;;  %v2659_v53 = vmul.f32 %v2562_v58, %v2467_v3 }
 0x5b8   : > { %v2714_v15 = vrot.slane %v2713_v10, 2  ;;  %v2829_v59 = vsel %vm1838_vm6, %v2703_v19, %v2828_v18 }
 0x5b9   : > { %v2710_v36 = vadd.f32 %v2709_v29, %v2708_v21  ;;  %v2720_v16 = vadd.f32 %v2719_v13, %v2718_v8  ;;  %v2725_v23 = vadd.f32 %v2659_v53, %v2658_v11  ;;  %v4908_v8 = vld [vmem:[#allocation23_spill] sm:$0xff]  ;;  %v4909_v13 = vld [vmem:[#allocation24_spill] sm:$0xff] }
 0x5ba   : > { %v2715_v49 = vadd.f32 %v2714_v15, %v2713_v10  ;;  %v2474_v52 = vunpack.c.l.bf16 %v4908_v8  ;;  %v2475_v3 = vunpack.c.h.bf16 %v4908_v8  ;;  %v2476_v11 = vunpack.c.l.bf16 %v4909_v13 }
 0x5bb   : > { %v2721_v40 = vrot.slane %v2720_v16, 2  ;;  %v2726_v24 = vrot.slane %v2725_v23, 4  ;;  %v2830_v31 = vsel %vm1840_vm7, %v2710_v36, %v2829_v59  ;;  %v2477_v36 = vunpack.c.h.bf16 %v4909_v13 }
 0x5bc   : > { %v2716_v63 = vrot.slane %v2715_v49, 1 }
 0x5bd   : > { %v2722_v45 = vadd.f32 %v2721_v40, %v2720_v16  ;;  %v2727_v30 = vadd.f32 %v2726_v24, %v2725_v23 }
 0x5be   : > { %v2717_v62 = vadd.f32 %v2716_v63, %v2715_v49 }
 0x5bf   : > { %v2723_v42 = vrot.slane %v2722_v45, 1  ;;  %v2728_v48 = vrot.slane %v2727_v30, 2 }
 0x5c0   : > { %v2831_v47 = vsel %vm1842_vm8, %v2717_v62, %v2830_v31 }
 0x5c1   : > { %v2729_v43 = vadd.f32 %v2728_v48, %v2727_v30  ;;  %v2724_v55 = vadd.f32 %v2723_v42, %v2722_v45  ;;  %v4910_v30 = vld [vmem:[#allocation25_spill] sm:$0xff] }
 0x5c2   : > { %v2478_v62 = vunpack.c.l.bf16 %v4910_v30 }
 0x5c3   : > { %v2730_v6 = vrot.slane %v2729_v43, 1  ;;  %v2832_v35 = vsel %vm1844_vm9, %v2724_v55, %v2831_v47 }
 0x5c5   : > { %v2731_v33 = vadd.f32 %v2730_v6, %v2729_v43 }
 0x5c7   : > { %v2833_v20 = vsel %vm1846_vm10, %v2731_v33, %v2832_v35  ;;  %v2479_v35 = vunpack.c.h.bf16 %v4910_v30 }
 0x5c8   : > { %3209 = vmatprep.mubr.f32.mxu0 %v2833_v20 }
 0x5d7   : > { %v2567_v5 = vpop.permute.xlu1 %2566  ;;  %v2572_v44 = vpop.permute.xlu0 %2571 }
 0x5d8   : > { %v2660_v28 = vmul.f32 %v2567_v5, %v2468_v32  ;;  %v2661_v12 = vmul.f32 %v2572_v44, %v2469_v7 }
 0x5da   : > { %v2732_v25 = vadd.f32 %v2661_v12, %v2660_v28 }
 0x5db   : > { %v2577_v41 = vpop.permute.xlu1 %2576  ;;  %v2582_v17 = vpop.permute.xlu0 %2581 }
 0x5dc   : > { %v2733_v9 = vrot.slane %v2732_v25, 4  ;;  %v2662_v54 = vmul.f32 %v2577_v41, %v2470_v60  ;;  %v2663_v34 = vmul.f32 %v2582_v17, %v2471_v4 }
 0x5de   : > { %v2734_v50 = vadd.f32 %v2733_v9, %v2732_v25  ;;  %v2739_v46 = vadd.f32 %v2663_v34, %v2662_v54  ;;  %v4911_v25 = vld [vmem:[#allocation26_spill] sm:$0xff] }
 0x5df   : > { %v2587_v51 = vpop.permute.xlu1 %2586  ;;  %v2592_v56 = vpop.permute.xlu0 %2591  ;;  %v2480_v14 = vunpack.c.l.bf16 %v4911_v25  ;;  %v2481_v60 = vunpack.c.h.bf16 %v4911_v25 }
 0x5e0   : > { %v2735_v27 = vrot.slane %v2734_v50, 2  ;;  %v2740_v26 = vrot.slane %v2739_v46, 4  ;;  %v2664_v57 = vmul.f32 %v2587_v51, %v2472_v39  ;;  %v2665_v18 = vmul.f32 %v2592_v56, %v2473_v22  ;;  %v4912_v56 = vld [vmem:[#allocation27_spill] sm:$0xff] }
 0x5e2   : > { %v2736_v37 = vadd.f32 %v2735_v27, %v2734_v50  ;;  %v2741_v0 = vadd.f32 %v2740_v26, %v2739_v46  ;;  %v2746_v21 = vadd.f32 %v2665_v18, %v2664_v57  ;;  %v2482_v27 = vunpack.c.l.bf16 %v4912_v56 }
 0x5e3   : > { %v2597_v1 = vpop.permute.xlu1 %2596  ;;  %v2602_v19 = vpop.permute.xlu0 %2601  ;;  %v2483_v26 = vunpack.c.h.bf16 %v4912_v56 }
 0x5e4   : > { %v2742_v10 = vrot.slane %v2741_v0, 2  ;;  %v2747_v61 = vrot.slane %v2746_v21, 4  ;;  %v2666_v58 = vmul.f32 %v2597_v1, %v2474_v52  ;;  %v2667_v29 = vmul.f32 %v2602_v19, %v2475_v3 }
 0x5e5   : > { %v2737_v53 = vrot.slane %v2736_v37, 1 }
 0x5e6   : > { %v2743_v15 = vadd.f32 %v2742_v10, %v2741_v0  ;;  %v2748_v59 = vadd.f32 %v2747_v61, %v2746_v21  ;;  %v2753_v16 = vadd.f32 %v2667_v29, %v2666_v58 }
 0x5e7   : > { %v2607_v23 = vpop.permute.xlu1 %2606  ;;  %v2612_v49 = vpop.permute.xlu0 %2611  ;;  %v2738_v42 = vadd.f32 %v2737_v53, %v2736_v37 }
 0x5e8   : > { %v2744_v40 = vrot.slane %v2743_v15, 1  ;;  %v2749_v24 = vrot.slane %v2748_v59, 2  ;;  %v2668_v31 = vmul.f32 %v2607_v23, %v2476_v11  ;;  %v2669_v63 = vmul.f32 %v2612_v49, %v2477_v36 }
 0x5e9   : > { %v2754_v45 = vrot.slane %v2753_v16, 4 }
 0x5ea   : > { %v2745_v48 = vadd.f32 %v2744_v40, %v2743_v15  ;;  %v2750_v47 = vadd.f32 %v2749_v24, %v2748_v59  ;;  %v2760_v43 = vadd.f32 %v2669_v63, %v2668_v31 }
 0x5eb   : > { %v2755_v55 = vadd.f32 %v2754_v45, %v2753_v16  ;;  %v2617_v6 = vpop.permute.xlu1 %2616  ;;  %v2622_v33 = vpop.permute.xlu0 %2621 }
 0x5ec   : > { %v2834_v20 = vsel %vm1834_vm4, %v2745_v48, %v2738_v42  ;;  %v2751_v2 = vrot.slane %v2750_v47, 1  ;;  %v2761_v32 = vrot.slane %v2760_v43, 4  ;;  %v2670_v7 = vmul.f32 %v2617_v6, %v2478_v62  ;;  %v3093_v42 = vld [vmem:[%s4818_s6] ss:$0 sm:$0xff] }
 0x5ed   : > { %v2756_v5 = vrot.slane %v2755_v55, 2  ;;  %v2671_v44 = vmul.f32 %v2622_v33, %v2479_v35 }
 0x5ee   : > { %v2752_v28 = vadd.f32 %v2751_v2, %v2750_v47  ;;  %v2762_v12 = vadd.f32 %v2761_v32, %v2760_v43 }
 0x5ef   : > { %v2757_v4 = vadd.f32 %v2756_v5, %v2755_v55  ;;  %v2767_v41 = vadd.f32 %v2671_v44, %v2670_v7  ;;  %v2627_v17 = vpop.permute.xlu1 %2626  ;;  %v2632_v9 = vpop.permute.xlu0 %2631 }
 0x5f0   : > { %v2835_v54 = vsel %vm1836_vm5, %v2752_v28, %v2834_v20  ;;  %v2763_v34 = vrot.slane %v2762_v12, 2  ;;  %v2672_v50 = vmul.f32 %v2627_v17, %v2480_v14  ;;  %v2673_v46 = vmul.f32 %v2632_v9, %v2481_v60 }
 0x5f1   : > { %v2758_v38 = vrot.slane %v2757_v4, 1  ;;  %v2768_v39 = vrot.slane %v2767_v41, 4 }
 0x5f2   : > { %v2764_v22 = vadd.f32 %v2763_v34, %v2762_v12  ;;  %v2774_v51 = vadd.f32 %v2673_v46, %v2672_v50 }
 0x5f3   : > { %v2759_v57 = vadd.f32 %v2758_v38, %v2757_v4  ;;  %v2769_v18 = vadd.f32 %v2768_v39, %v2767_v41  ;;  %v2637_v37 = vpop.permute.xlu1 %2636  ;;  %v2642_v0 = vpop.permute.xlu0 %2641 }
 0x5f4   : > { %v2765_v21 = vrot.slane %v2764_v22, 1  ;;  %v2775_v8 = vrot.slane %v2774_v51, 4  ;;  %v2674_v52 = vmul.f32 %v2637_v37, %v2482_v27  ;;  %v2675_v1 = vmul.f32 %v2642_v0, %v2483_v26 }
 0x5f5   : > { %v2836_v3 = vsel %vm1838_vm6, %v2759_v57, %v2835_v54  ;;  %v2770_v19 = vrot.slane %v2769_v18, 2 }
 0x5f6   : > { %v2766_v10 = vadd.f32 %v2765_v21, %v2764_v22  ;;  %v2776_v61 = vadd.f32 %v2775_v8, %v2774_v51  ;;  %v2781_v58 = vadd.f32 %v2675_v1, %v2674_v52 }
 0x5f7   : > { %v2771_v29 = vadd.f32 %v2770_v19, %v2769_v18 }
 0x5f8   : > { %v2777_v13 = vrot.slane %v2776_v61, 2  ;;  %v2782_v11 = vrot.slane %v2781_v58, 4  ;;  %v2837_v53 = vsel %vm1840_vm7, %v2766_v10, %v2836_v3 }
 0x5f9   : > { %v2772_v15 = vrot.slane %v2771_v29, 1 }
 0x5fa   : > { %v2778_v59 = vadd.f32 %v2777_v13, %v2776_v61  ;;  %v2783_v36 = vadd.f32 %v2782_v11, %v2781_v58 }
 0x5fb   : > { %v2773_v16 = vadd.f32 %v2772_v15, %v2771_v29 }
 0x5fc   : > { %v2779_v23 = vrot.slane %v2778_v59, 1  ;;  %v2784_v49 = vrot.slane %v2783_v36, 2 }
 0x5fd   : > { %v2838_v40 = vsel %vm1842_vm8, %v2773_v16, %v2837_v53 }
 0x5fe   : > { %v2780_v24 = vadd.f32 %v2779_v23, %v2778_v59  ;;  %v2785_v31 = vadd.f32 %v2784_v49, %v2783_v36 }
 0x600   : > { %v2786_v63 = vrot.slane %v2785_v31, 1  ;;  %v2839_v45 = vsel %vm1844_vm9, %v2780_v24, %v2838_v40 }
 0x602   : > { %v2787_v30 = vadd.f32 %v2786_v63, %v2785_v31 }
 0x604   : > { %v2840_v62 = vsel %vm1846_vm10, %v2787_v30, %v2839_v45 }
 0x605   : > { %3210 = vmatmul.mubr.f32.vlgmr.msra.gmra.mxu0 %v2840_v62 }
 0x6c5   : > { %v3211_v48 = vpop.f32.mrf.mxu0 }
 0x6c6   : > { %v2915_v47 = vadd.f32 %v3211_v48, %v3093_v42 }
 0x6c7   : > { %v2909_v43 = vpop.f32.mrf.mxu0 }
 0x6c8   : > { %2919 = vst [vmem:[%s342_s14 + $0x8] sm:$0xff] %v2915_v47  ;;  %v2910_v55 = vadd.f32 %v3093_v42, %v2909_v43 }
 0x6ca   : > { %2918 = vst [vmem:[%s342_s14] sm:$0xff] %v2910_v55 }
 0x6cb   : > { %3619 = shalt.err (!%p3616_p11)
}
 0x6cc   : > { %s3620_s10 = scalar_lea.hbm %s4769_s19, 256  ;;  %s3624_s13 = scalar_lea.hbm %s4819_s7, 512 }
 0x6cd   : > { %p3621_p9 = scmp.ne.s32.totalorder %s4769_s19, %s3620_s10  ;;  %p3625_p6 = scmp.lt.s32.totalorder %s4769_s19, %s4819_s7 }
 0x6ce   : > { %p3626_p8 = scmp.lt.s32.totalorder %s3624_s13, %s3620_s10 }
 0x6cf   : > { %p3622_p1 = pnand %p3621_p9, %p4913_p7 }
 0x6d0   : > { %p3627_p5 = por %p3626_p8, %p3625_p6 }
 0x6d1   : > { %p3623_p4 = pneg %p3622_p1 }
 0x6d3   : > { %p3628_p2 = pnand %p3627_p5, %p3623_p4 }
 0x6d5   : > { %3631 = shalt.err (!%p3628_p2)
}
 0x6d6   : > { %s3684_s3 = smov 128   ;;  %s3685_s15 = smov 8  }
 0x6d7   : > { %3238 = dma.vmem_to_hbm [thread:$0]  (%p4913_p7), %s4764_s16, 256, %s4769_s19, %s2921_s9, %s3684_s3, %s3684_s3, %s3685_s15  }
 0x6d8 PF: > { %s2949_s20 = sand.u32 1, %s3662_s24   ;;  %p4914_p12 = scmp.ne.s32.totalorder %s4863_s8, 0 }
 0x6d9   : > { %p4915_p13 = scmp.ge.s32.totalorder %s3674_s27, 2  ;;  %s2950_s28 = scalar_lea.sflag [#allocation4], %s2949_s20 }
 0x6db   : > { %p3252_p0 = pnand %p4915_p13, %p4914_p12 }
 0x6dd   : > { %p3253_p10 = pneg %p3252_p0 }
 0x6df   : > { %3657 = dma.done.wait (%p3253_p10), %s2950_s28, 256  }
 0x6e0   : > { %3659 = vsyncadd (%p3253_p10), %s2950_s28, 4294967040  ;;  %p21_p3 = scmp.ge.s32.totalorder %s3804_s23, 4   ;;  %s4916_s24 = smov %s3666_s25 }
 0x6e1   : > { %s4917_s25 = smov %s3670_s26  ;;  %s4918_s26 = smov %s3820_s12 }
 0x6e2   : > { %s4919_s27 = smov %s3804_s23  ;;  %23 = sbr.rel (!%p21_p3) target bundleno = 8 (0x8), region = 104 }
 0x6e7   :  { %2955 = vsyncpa [#allocation3], 1 }
 0x6e8   :  { %2957 = vsyncpa [#allocation3 + $0x1], 1 }
 0x6e9   :  { %2958 = vsyncpa [#allocation6], 1 }
 0x6ea   :  { %2959 = vsyncpa [#allocation4], 1 }
 0x6eb   :  { %2961 = vsyncpa [#allocation4 + $0x1], 1 }

</bundles_post_ra>
